<compile_context>
chip_gen: v7x
topology: tpu7x:2x2x1
jax: 0.10.0
libtpu: 0.0.40
codegen_flags: <defaults>
</compile_context>

<pallas_src>
import numpy as np
import jax
import jax.numpy as jnp
from jax import lax
from jax.experimental import pallas as pl
from jax.experimental.pallas import tpu as pltpu

F32 = jnp.float32


def _dot(a, b):
    return jnp.dot(a, b, preferred_element_type=F32)


# ---------------------------------------------------------------------------
# Kernel 1: QuestionProcessor (phrase features + LSTM) for the whole batch.
# Rows are t-major flat: row r = t*B + b, so a shift by B rows == one time step.
# ---------------------------------------------------------------------------
def question_processor(w_embed, pp, lp):
    B, T, D = w_embed.shape
    TB = T * B

    def kernel(w_ref, wcur_ref, bcur_ref, wprev_ref, wnext_ref,
               wih_ref, whh_ref, bl_ref, p_ref, q_ref):
        xf = w_ref[...]                                   # (T*B, D)
        zero = jnp.zeros((B, D), F32)
        # x[t-1] / x[t+1] with zero padding at the sequence ends (per batch element).
        x_prev = jnp.concatenate([zero, xf[:-B]], axis=0)
        x_next = jnp.concatenate([xf[B:], zero], axis=0)

        # Phrase features: weights concatenated host-side -> 3 wide matmuls.
        y = _dot(xf, wcur_ref[...]) + bcur_ref[...]       # (T*B, 3D) = [uni | bi | tri]
        pr = _dot(x_prev, wprev_ref[...])                 # (T*B, 2D) = [bi  | tri]
        nx = _dot(x_next, wnext_ref[...])                 # (T*B, D)  =        tri
        uni = y[:, :D]
        bi = y[:, D:2 * D] + pr[:, :D]
        tri = y[:, 2 * D:] + pr[:, D:] + nx
        p = jnp.tanh(jnp.maximum(jnp.maximum(uni, bi), tri))
        # TODO(synk): nn.Dropout(0.5) is eval-mode identity here.
        p_ref[...] = p

        # LSTM: input projection hoisted out of the time loop (one (T*B,D)@(D,4D) matmul),
        # then a single (B,D)@(D,4D) matmul per step.  Torch gate order i,f,g,o.
        xg = _dot(p, wih_ref[...]) + bl_ref[...]          # (T*B, 4D), bias folded in once
        whh = whh_ref[...]                                # (D, 4D)
        h = jnp.zeros((B, D), F32)
        c = jnp.zeros((B, D), F32)
        hs = []
        for t in range(T):                                # static, fully unrolled
            r = t * B
            g = xg[r:r + B, :] + _dot(h, whh)             # (B, 4D)
            i_g = jax.nn.sigmoid(g[:, :D])
            f_g = jax.nn.sigmoid(g[:, D:2 * D])
            g_g = jnp.tanh(g[:, 2 * D:3 * D])
            o_g = jax.nn.sigmoid(g[:, 3 * D:])
            c = f_g * c + i_g * g_g
            h = o_g * jnp.tanh(c)
            hs.append(h)
        q_ref[...] = jnp.concatenate(hs, axis=0)          # one bulk store after the loop

    w_flat = jnp.transpose(w_embed, (1, 0, 2)).reshape(TB, D)
    p_flat, q_flat = pl.pallas_call(
        kernel,
        out_shape=(jax.ShapeDtypeStruct((TB, D), F32),
                   jax.ShapeDtypeStruct((TB, D), F32)),
    )(w_flat, pp["wcur"], pp["bcur"], pp["wprev"], pp["wnext"],
      lp["wih"], lp["whh"], lp["b"])
    p_embed = p_flat.reshape(T, B, D).transpose(1, 0, 2)  # (B, T, D)
    q_embed = q_flat.reshape(T, B, D).transpose(1, 0, 2)  # (B, T, D), unmasked
    return p_embed, q_embed


# ---------------------------------------------------------------------------
# Kernel 2: fused 3-stream ParallelAttention + classifier head.
# grid=(3,) over the w/p/q streams; image + head weights are VMEM-resident
# (constant index_map); res1/res2 carried across streams in a VMEM scratch.
# ---------------------------------------------------------------------------
def attention_and_head(q_stack, img, ap, hp):
    S, B, T, D = q_stack.shape
    N = img.shape[1]
    H = ap["waff"].shape[2]
    A = hp["wc"].shape[1]

    def kernel(q_ref, im_ref, waff_ref, wq_ref, bq_ref, wi_ref, bi_ref,
               wqt_ref, wit_ref, bqt_ref, bit_ref,
               w1_ref, b1_ref, w2a_ref, w2b_ref, b2_ref,
               w3a_ref, w3b_ref, b3_ref, wc_ref, bc_ref,
               out_ref, res_ref):
        s = pl.program_id(0)
        q = q_ref[0]                                      # (B, T, D)  current stream
        im = im_ref[...]                                  # (B, N, D)  resident across streams
        qf = q.reshape(B * T, D)                          # flattened for >=8-row matmuls
        imf = im.reshape(B * N, D)

        proj = _dot(qf, waff_ref[0]).reshape(B, T, H)                 # affinity(q)
        b_lin = (_dot(qf, wq_ref[0]) + bq_ref[0]).reshape(B, T, H)    # ques_linear
        a_lin = (_dot(imf, wi_ref[0]) + bi_ref[0]).reshape(B, N, H)   # img_linear

        # C and C^T via contract-last-dim batched matmuls (no explicit transposes).
        C = jnp.tanh(jnp.einsum("bth,bnh->btn", proj, im,
                                preferred_element_type=F32))
        Ct = jnp.tanh(jnp.einsum("bnh,bth->bnt", im, proj,
                                 preferred_element_type=F32))

        h_vis = jnp.tanh(a_lin + jnp.einsum("bnt,bth->bnh", Ct, b_lin,
                                            preferred_element_type=F32))
        h_ques = jnp.tanh(b_lin + jnp.einsum("btn,bnh->bth", C, a_lin,
                                             preferred_element_type=F32))

        # 1-output linears as lane reductions; their scalar biases come from SMEM.
        att_v = jnp.sum(h_vis * wit_ref[0], axis=-1, keepdims=True) + bit_ref[s]   # (B,N,1)
        att_q = jnp.sum(h_ques * wqt_ref[0], axis=-1, keepdims=True) + bqt_ref[s]  # (B,T,1)

        def softmax_mid(x):                               # softmax over axis=1 of (B,K,1)
            m = jnp.max(x, axis=1, keepdims=True)
            e = jnp.exp(x - m)
            return e / jnp.sum(e, axis=1, keepdims=True)

        fv = jnp.sum(im * softmax_mid(att_v), axis=1)     # (B, D)
        fq = jnp.sum(q * softmax_mid(att_q), axis=1)      # (B, D)
        feat = fv + fq

        # Classifier head fused into the stream epilogue (sequential across streams,
        # hence dimension_semantics=("arbitrary",)).
        @pl.when(s == 0)
        def _():
            res_ref[...] = jnp.tanh(_dot(feat, w1_ref[...]) + b1_ref[...])

        @pl.when(s == 1)
        def _():
            res_ref[...] = jnp.tanh(_dot(feat, w2a_ref[...])
                                    + _dot(res_ref[...], w2b_ref[...]) + b2_ref[...])

        @pl.when(s == 2)
        def _():
            res3 = jnp.tanh(_dot(feat, w3a_ref[...])
                            + _dot(res_ref[...], w3b_ref[...]) + b3_ref[...])
            out_ref[...] = _dot(res3, wc_ref[...]) + bc_ref[...]

    def stream(nd):                     # per-stream block, indexed by the grid axis
        zeros = (0,) * len(nd)
        return pl.BlockSpec((1,) + nd, lambda s: (s,) + zeros)

    def fixed(nd):                      # constant index -> loaded once, VMEM-resident
        zeros = (0,) * len(nd)
        return pl.BlockSpec(nd, lambda s: zeros)

    def smem():
        return pl.BlockSpec(memory_space=pltpu.MemorySpace.SMEM)

    return pl.pallas_call(
        kernel,
        out_shape=jax.ShapeDtypeStruct((B, A), F32),
        grid=(S,),
        in_specs=[stream((B, T, D)),            # stacked question streams (3,B,T,D)
                  fixed((B, N, D)),             # image, resident across streams
                  stream((D, H)), stream((D, H)), stream((1, H)),
                  stream((D, H)), stream((1, H)),
                  stream((1, 1, H)), stream((1, 1, H)),
                  smem(), smem(),               # bqt, bit scalar biases in SMEM
                  fixed((D, D)), fixed((1, D)),
                  fixed((D, D)), fixed((D, D)), fixed((1, D)),
                  fixed((D, D)), fixed((D, D)), fixed((1, D)),
                  fixed((D, A)), fixed((1, A))],
        out_specs=pl.BlockSpec((B, A), lambda s: (0, 0)),
        scratch_shapes=[pltpu.VMEM((B, D), F32)],
        compiler_params=pltpu.CompilerParams(
            dimension_semantics=("arbitrary",)),
    )(q_stack, img,
      ap["waff"], ap["wq"], ap["bq"], ap["wi"], ap["bi"],
      ap["wqt"], ap["wit"], ap["bqt"], ap["bit"],
      hp["w1"], hp["b1"], hp["w2a"], hp["w2b"], hp["b2"],
      hp["w3a"], hp["w3b"], hp["b3"], hp["wc"], hp["bc"])


# ---------------------------------------------------------------------------
# Full forward (glue: embedding lookup, layout transposes, mask, stream stack)
# ---------------------------------------------------------------------------
def coattention_forward(params, image_encoding, question_encoding,
                        question_encoding_oh, question_length):
    del question_encoding_oh                      # unused by the torch forward as well
    B, D, Hs, Ws = image_encoding.shape
    T = question_encoding.shape[1]

    w_embed = params["emb"][question_encoding]                        # (B, T, D)
    p_embed, q_seq = question_processor(w_embed, params["phrase"], params["lstm"])
    # pack_padded/pad_packed -> zero outputs past question_length (applied in XLA).
    mask = (jnp.arange(T)[None, :] < question_length[:, None]).astype(F32)[:, :, None]
    q_embed = q_seq * mask

    img = image_encoding.reshape(B, D, Hs * Ws).transpose(0, 2, 1)    # (B, N, D), once
    q_stack = jnp.stack([w_embed, p_embed, q_embed], axis=0)          # (3, B, T, D)
    return attention_and_head(q_stack, img, params["att"], params["head"])


# ---------------------------------------------------------------------------
# Pure-JAX reference (same parameterization) for the correctness check
# ---------------------------------------------------------------------------
def reference_forward(params, image_encoding, question_encoding,
                      question_encoding_oh, question_length):
    del question_encoding_oh
    B, D, Hs, Ws = image_encoding.shape
    T = question_encoding.shape[1]
    x = params["emb"][question_encoding]

    pp = params["phrase"]
    zero = jnp.zeros((B, 1, D), F32)
    x_prev = jnp.concatenate([zero, x[:, :-1]], axis=1)
    x_next = jnp.concatenate([x[:, 1:], zero], axis=1)
    y = x @ pp["wcur"] + pp["bcur"]
    pr = x_prev @ pp["wprev"]
    nx = x_next @ pp["wnext"]
    uni = y[..., :D]
    bi = y[..., D:2 * D] + pr[..., :D]
    tri = y[..., 2 * D:] + pr[..., D:] + nx
    p_embed = jnp.tanh(jnp.maximum(jnp.maximum(uni, bi), tri))

    lp = params["lstm"]

    def cell(carry, x_t):
        h, c = carry
        g = x_t @ lp["wih"] + h @ lp["whh"] + lp["b"]
        i = jax.nn.sigmoid(g[:, :D]); f = jax.nn.sigmoid(g[:, D:2 * D])
        gg = jnp.tanh(g[:, 2 * D:3 * D]); o = jax.nn.sigmoid(g[:, 3 * D:])
        c = f * c + i * gg
        h = o * jnp.tanh(c)
        return (h, c), h

    _, hs = lax.scan(cell, (jnp.zeros((B, D), F32), jnp.zeros((B, D), F32)),
                     jnp.swapaxes(p_embed, 0, 1))
    mask = (jnp.arange(T)[None, :] < question_length[:, None]).astype(F32)[:, :, None]
    q_embed = jnp.swapaxes(hs, 0, 1) * mask

    im = image_encoding.reshape(B, D, Hs * Ws).transpose(0, 2, 1)     # (B, N, D)
    ap = params["att"]
    feats = []
    for i, q in enumerate([x, p_embed, q_embed]):
        proj = q @ ap["waff"][i]
        b_lin = q @ ap["wq"][i] + ap["bq"][i]
        a_lin = im @ ap["wi"][i] + ap["bi"][i]
        C = jnp.tanh(jnp.einsum("bth,bnh->btn", proj, im))
        h_vis = jnp.tanh(a_lin + jnp.einsum("btn,bth->bnh", C, b_lin))
        h_ques = jnp.tanh(b_lin + jnp.einsum("btn,bnh->bth", C, a_lin))
        av = jax.nn.softmax(jnp.sum(h_vis * ap["wit"][i], axis=-1) + ap["bit"][i], axis=-1)
        aq = jax.nn.softmax(jnp.sum(h_ques * ap["wqt"][i], axis=-1) + ap["bqt"][i], axis=-1)
        fv = jnp.einsum("bn,bnd->bd", av, im)
        fq = jnp.einsum("bt,btd->bd", aq, q)
        feats.append(fv + fq)

    hp = params["head"]
    res1 = jnp.tanh(feats[0] @ hp["w1"] + hp["b1"])
    res2 = jnp.tanh(feats[1] @ hp["w2a"] + res1 @ hp["w2b"] + hp["b2"])
    res3 = jnp.tanh(feats[2] @ hp["w3a"] + res2 @ hp["w3b"] + hp["b3"])
    return res3 @ hp["wc"] + hp["bc"]


# ---------------------------------------------------------------------------
# Deterministic parameter init (weights stored pre-transposed / pre-concatenated)
# ---------------------------------------------------------------------------
def init_params(key, D, H, q_vocab, a_vocab):
    assert H == D, "affinity matmul in the torch forward requires hidden==embedding"
    keys = iter(jax.random.split(key, 64))

    def mat(shape, scale=0.1):
        return jax.random.normal(next(keys), shape, F32) * scale

    emb = mat((q_vocab, D)).at[0].set(0.0)      # padding_idx=0
    # phrase conv weights concatenated: wcur=[wu|wb1|wt1], bcur=[bu|bb|bt], wprev=[wb0|wt0]
    phrase = dict(wcur=mat((D, 3 * D)), bcur=mat((1, 3 * D)),
                  wprev=mat((D, 2 * D)), wnext=mat((D, D)))
    # LSTM gates concatenated (i,f,g,o): wih/whh (D,4D), b = b_ih + b_hh (1,4D)
    lstm = dict(wih=mat((D, 4 * D)), whh=mat((D, 4 * D)), b=mat((1, 4 * D)))
    # three ParallelAttention modules stacked along a leading stream axis of 3
    att = dict(waff=mat((3, D, H)), wq=mat((3, D, H)), bq=mat((3, 1, H)),
               wi=mat((3, D, H)), bi=mat((3, 1, H)),
               wqt=mat((3, 1, 1, H)), bqt=mat((3,)),
               wit=mat((3, 1, 1, H)), bit=mat((3,)))
    head = dict(w1=mat((D, D)), b1=mat((1, D)),
                w2a=mat((D, D)), w2b=mat((D, D)), b2=mat((1, D)),
                w3a=mat((D, D)), w3b=mat((D, D)), b3=mat((1, D)),
                wc=mat((D, a_vocab)), bc=mat((1, a_vocab)))
    return dict(emb=emb, phrase=phrase, lstm=lstm, att=att, head=head)


if __name__ == "__main__":
    B, D, T = 2, 32, 8          # batch, embedding_size (=hidden_size), seq len
    Hs = Ws = 4                 # image spatial -> N = 16 regions
    q_vocab, a_vocab = 50, 16

    key = jax.random.PRNGKey(0)
    kp, ki, kq = jax.random.split(key, 3)
    params = init_params(kp, D, D, q_vocab, a_vocab)

    image_encoding = jax.random.normal(ki, (B, D, Hs, Ws), F32)          # NCHW
    question_encoding = jax.random.randint(kq, (B, T), 0, q_vocab)
    question_encoding_oh = jax.nn.one_hot(question_encoding, q_vocab)    # unused (as in torch)
    question_length = jnp.array([T, 5], jnp.int32)                       # sorted descending

    fwd = jax.jit(coattention_forward)
    logits = fwd(params, image_encoding, question_encoding,
                 question_encoding_oh, question_length)
    jax.block_until_ready(logits)
    assert logits.shape == (B, a_vocab)

    ref = reference_forward(params, image_encoding, question_encoding,
                            question_encoding_oh, question_length)
    np.testing.assert_allclose(np.asarray(logits), np.asarray(ref),
                               atol=5e-3, rtol=5e-3)
    print("KERNEL_OK")
</pallas_src>

<mosaic_0001>
module attributes {stable_mosaic.version = 11 : i64} {
  func.func @kernel(%arg0: memref<16x32xf32, #tpu.memory_space<vmem>>, %arg1: memref<32x96xf32, #tpu.memory_space<vmem>>, %arg2: memref<1x96xf32, #tpu.memory_space<vmem>>, %arg3: memref<32x64xf32, #tpu.memory_space<vmem>>, %arg4: memref<32x32xf32, #tpu.memory_space<vmem>>, %arg5: memref<32x128xf32, #tpu.memory_space<vmem>>, %arg6: memref<32x128xf32, #tpu.memory_space<vmem>>, %arg7: memref<1x128xf32, #tpu.memory_space<vmem>>, %arg8: memref<16x32xf32, #tpu.memory_space<vmem>>, %arg9: memref<16x32xf32, #tpu.memory_space<vmem>>) attributes {dimension_semantics = [], scalar_prefetch = 0 : i64, scratch_operands = 0 : i64, tpu.core_type = #tpu.core_type<tc>} {
    %c0 = arith.constant 0 : index
    %c0_0 = arith.constant 0 : index
    %0 = vector.load %arg0[%c0, %c0_0] : memref<16x32xf32, #tpu.memory_space<vmem>>, vector<16x32xf32>
    %cst = arith.constant 0.000000e+00 : f32
    %1 = vector.broadcast %cst : f32 to vector<2x32xf32>
    %2 = vector.extract_strided_slice %0 {offsets = [0, 0], sizes = [14, 32], strides = [1, 1]} : vector<16x32xf32> to vector<14x32xf32>
    %3 = tpu.concatenate %1, %2 in 0 : vector<2x32xf32>, vector<14x32xf32> -> vector<16x32xf32>
    %4 = vector.extract_strided_slice %0 {offsets = [2, 0], sizes = [14, 32], strides = [1, 1]} : vector<16x32xf32> to vector<14x32xf32>
    %5 = tpu.concatenate %4, %1 in 0 : vector<14x32xf32>, vector<2x32xf32> -> vector<16x32xf32>
    %c0_1 = arith.constant 0 : index
    %c0_2 = arith.constant 0 : index
    %6 = vector.load %arg1[%c0_1, %c0_2] : memref<32x96xf32, #tpu.memory_space<vmem>>, vector<32x96xf32>
    %cst_3 = arith.constant dense<0.000000e+00> : vector<16x96xf32>
    %7 = tpu.matmul %0, %6, %cst_3 {dimension_numbers = #tpu.dot_dimension_numbers<[1], [0], [0], [1], [0, 0, 1, 1], [], []>} : vector<16x32xf32>, vector<32x96xf32>, vector<16x96xf32> -> vector<16x96xf32>
    %c0_4 = arith.constant 0 : index
    %c0_5 = arith.constant 0 : index
    %8 = vector.load %arg2[%c0_4, %c0_5] : memref<1x96xf32, #tpu.memory_space<vmem>>, vector<1x96xf32>
    %9 = vector.broadcast %8 : vector<1x96xf32> to vector<16x96xf32>
    %10 = arith.addf %7, %9 : vector<16x96xf32>
    %c0_6 = arith.constant 0 : index
    %c0_7 = arith.constant 0 : index
    %11 = vector.load %arg3[%c0_6, %c0_7] : memref<32x64xf32, #tpu.memory_space<vmem>>, vector<32x64xf32>
    %cst_8 = arith.constant dense<0.000000e+00> : vector<16x64xf32>
    %12 = tpu.matmul %3, %11, %cst_8 {dimension_numbers = #tpu.dot_dimension_numbers<[1], [0], [0], [1], [0, 0, 1, 1], [], []>} : vector<16x32xf32>, vector<32x64xf32>, vector<16x64xf32> -> vector<16x64xf32>
    %c0_9 = arith.constant 0 : index
    %c0_10 = arith.constant 0 : index
    %13 = vector.load %arg4[%c0_9, %c0_10] : memref<32x32xf32, #tpu.memory_space<vmem>>, vector<32x32xf32>
    %cst_11 = arith.constant dense<0.000000e+00> : vector<16x32xf32>
    %14 = tpu.matmul %5, %13, %cst_11 {dimension_numbers = #tpu.dot_dimension_numbers<[1], [0], [0], [1], [0, 0, 1, 1], [], []>} : vector<16x32xf32>, vector<32x32xf32>, vector<16x32xf32> -> vector<16x32xf32>
    %15 = vector.extract_strided_slice %10 {offsets = [0, 0], sizes = [16, 32], strides = [1, 1]} : vector<16x96xf32> to vector<16x32xf32>
    %16 = vector.extract_strided_slice %10 {offsets = [0, 32], sizes = [16, 32], strides = [1, 1]} : vector<16x96xf32> to vector<16x32xf32>
    %17 = vector.extract_strided_slice %12 {offsets = [0, 0], sizes = [16, 32], strides = [1, 1]} : vector<16x64xf32> to vector<16x32xf32>
    %18 = arith.addf %16, %17 : vector<16x32xf32>
    %19 = vector.extract_strided_slice %10 {offsets = [0, 64], sizes = [16, 32], strides = [1, 1]} : vector<16x96xf32> to vector<16x32xf32>
    %20 = vector.extract_strided_slice %12 {offsets = [0, 32], sizes = [16, 32], strides = [1, 1]} : vector<16x64xf32> to vector<16x32xf32>
    %21 = arith.addf %19, %20 : vector<16x32xf32>
    %22 = arith.addf %21, %14 : vector<16x32xf32>
    %23 = arith.maximumf %15, %18 : vector<16x32xf32>
    %24 = arith.maximumf %23, %22 : vector<16x32xf32>
    %25 = math.tanh %24 : vector<16x32xf32>
    %c0_12 = arith.constant 0 : index
    %c0_13 = arith.constant 0 : index
    %26 = vector.load %arg8[%c0_12, %c0_13] : memref<16x32xf32, #tpu.memory_space<vmem>>, vector<16x32xf32>
    tpu.vector_store %arg8[%c0_12, %c0_13], %25 {strides = array<i32>} : memref<16x32xf32, #tpu.memory_space<vmem>>, vector<16x32xf32>,
    %c0_14 = arith.constant 0 : index
    %c0_15 = arith.constant 0 : index
    %27 = vector.load %arg5[%c0_14, %c0_15] : memref<32x128xf32, #tpu.memory_space<vmem>>, vector<32x128xf32>
    %cst_16 = arith.constant dense<0.000000e+00> : vector<16x128xf32>
    %28 = tpu.matmul %25, %27, %cst_16 {dimension_numbers = #tpu.dot_dimension_numbers<[1], [0], [0], [1], [0, 0, 1, 1], [], []>} : vector<16x32xf32>, vector<32x128xf32>, vector<16x128xf32> -> vector<16x128xf32>
    %c0_17 = arith.constant 0 : index
    %c0_18 = arith.constant 0 : index
    %29 = vector.load %arg7[%c0_17, %c0_18] : memref<1x128xf32, #tpu.memory_space<vmem>>, vector<1x128xf32>
    %30 = vector.broadcast %29 : vector<1x128xf32> to vector<16x128xf32>
    %31 = arith.addf %28, %30 : vector<16x128xf32>
    %c0_19 = arith.constant 0 : index
    %c0_20 = arith.constant 0 : index
    %32 = vector.load %arg6[%c0_19, %c0_20] : memref<32x128xf32, #tpu.memory_space<vmem>>, vector<32x128xf32>
    %cst_21 = arith.constant 0.000000e+00 : f32
    %33 = vector.broadcast %cst_21 : f32 to vector<2x32xf32>
    %cst_22 = arith.constant 0.000000e+00 : f32
    %34 = vector.broadcast %cst_22 : f32 to vector<2x32xf32>
    %35 = vector.extract_strided_slice %31 {offsets = [0, 0], sizes = [2, 128], strides = [1, 1]} : vector<16x128xf32> to vector<2x128xf32>
    %cst_23 = arith.constant dense<0.000000e+00> : vector<2x128xf32>
    %36 = tpu.matmul %33, %32, %cst_23 {dimension_numbers = #tpu.dot_dimension_numbers<[1], [0], [0], [1], [0, 0, 1, 1], [], []>} : vector<2x32xf32>, vector<32x128xf32>, vector<2x128xf32> -> vector<2x128xf32>
    %37 = arith.addf %35, %36 : vector<2x128xf32>
    %38 = vector.extract_strided_slice %37 {offsets = [0, 0], sizes = [2, 32], strides = [1, 1]} : vector<2x128xf32> to vector<2x32xf32>
    %39 = arith.negf %38 : vector<2x32xf32>
    %40 = math.exp %39 : vector<2x32xf32>
    %cst_24 = arith.constant 1.000000e+00 : f32
    %41 = vector.broadcast %cst_24 : f32 to vector<2x32xf32>
    %42 = arith.addf %41, %40 : vector<2x32xf32>
    %43 = arith.divf %41, %42 : vector<2x32xf32>
    %44 = vector.extract_strided_slice %37 {offsets = [0, 32], sizes = [2, 32], strides = [1, 1]} : vector<2x128xf32> to vector<2x32xf32>
    %45 = arith.negf %44 : vector<2x32xf32>
    %46 = math.exp %45 : vector<2x32xf32>
    %cst_25 = arith.constant 1.000000e+00 : f32
    %47 = vector.broadcast %cst_25 : f32 to vector<2x32xf32>
    %48 = arith.addf %47, %46 : vector<2x32xf32>
    %49 = arith.divf %47, %48 : vector<2x32xf32>
    %50 = vector.extract_strided_slice %37 {offsets = [0, 64], sizes = [2, 32], strides = [1, 1]} : vector<2x128xf32> to vector<2x32xf32>
    %51 = math.tanh %50 : vector<2x32xf32>
    %52 = vector.extract_strided_slice %37 {offsets = [0, 96], sizes = [2, 32], strides = [1, 1]} : vector<2x128xf32> to vector<2x32xf32>
    %53 = arith.negf %52 : vector<2x32xf32>
    %54 = math.exp %53 : vector<2x32xf32>
    %cst_26 = arith.constant 1.000000e+00 : f32
    %55 = vector.broadcast %cst_26 : f32 to vector<2x32xf32>
    %56 = arith.addf %55, %54 : vector<2x32xf32>
    %57 = arith.divf %55, %56 : vector<2x32xf32>
    %58 = arith.mulf %49, %34 : vector<2x32xf32>
    %59 = arith.mulf %43, %51 : vector<2x32xf32>
    %60 = arith.addf %58, %59 : vector<2x32xf32>
    %61 = math.tanh %60 : vector<2x32xf32>
    %62 = arith.mulf %57, %61 : vector<2x32xf32>
    %63 = vector.extract_strided_slice %31 {offsets = [2, 0], sizes = [2, 128], strides = [1, 1]} : vector<16x128xf32> to vector<2x128xf32>
    %cst_27 = arith.constant dense<0.000000e+00> : vector<2x128xf32>
    %64 = tpu.matmul %62, %32, %cst_27 {dimension_numbers = #tpu.dot_dimension_numbers<[1], [0], [0], [1], [0, 0, 1, 1], [], []>} : vector<2x32xf32>, vector<32x128xf32>, vector<2x128xf32> -> vector<2x128xf32>
    %65 = arith.addf %63, %64 : vector<2x128xf32>
    %66 = vector.extract_strided_slice %65 {offsets = [0, 0], sizes = [2, 32], strides = [1, 1]} : vector<2x128xf32> to vector<2x32xf32>
    %67 = arith.negf %66 : vector<2x32xf32>
    %68 = math.exp %67 : vector<2x32xf32>
    %cst_28 = arith.constant 1.000000e+00 : f32
    %69 = vector.broadcast %cst_28 : f32 to vector<2x32xf32>
    %70 = arith.addf %69, %68 : vector<2x32xf32>
    %71 = arith.divf %69, %70 : vector<2x32xf32>
    %72 = vector.extract_strided_slice %65 {offsets = [0, 32], sizes = [2, 32], strides = [1, 1]} : vector<2x128xf32> to vector<2x32xf32>
    %73 = arith.negf %72 : vector<2x32xf32>
    %74 = math.exp %73 : vector<2x32xf32>
    %cst_29 = arith.constant 1.000000e+00 : f32
    %75 = vector.broadcast %cst_29 : f32 to vector<2x32xf32>
    %76 = arith.addf %75, %74 : vector<2x32xf32>
    %77 = arith.divf %75, %76 : vector<2x32xf32>
    %78 = vector.extract_strided_slice %65 {offsets = [0, 64], sizes = [2, 32], strides = [1, 1]} : vector<2x128xf32> to vector<2x32xf32>
    %79 = math.tanh %78 : vector<2x32xf32>
    %80 = vector.extract_strided_slice %65 {offsets = [0, 96], sizes = [2, 32], strides = [1, 1]} : vector<2x128xf32> to vector<2x32xf32>
    %81 = arith.negf %80 : vector<2x32xf32>
    %82 = math.exp %81 : vector<2x32xf32>
    %cst_30 = arith.constant 1.000000e+00 : f32
    %83 = vector.broadcast %cst_30 : f32 to vector<2x32xf32>
    %84 = arith.addf %83, %82 : vector<2x32xf32>
    %85 = arith.divf %83, %84 : vector<2x32xf32>
    %86 = arith.mulf %77, %60 : vector<2x32xf32>
    %87 = arith.mulf %71, %79 : vector<2x32xf32>
    %88 = arith.addf %86, %87 : vector<2x32xf32>
    %89 = math.tanh %88 : vector<2x32xf32>
    %90 = arith.mulf %85, %89 : vector<2x32xf32>
    %91 = vector.extract_strided_slice %31 {offsets = [4, 0], sizes = [2, 128], strides = [1, 1]} : vector<16x128xf32> to vector<2x128xf32>
    %cst_31 = arith.constant dense<0.000000e+00> : vector<2x128xf32>
    %92 = tpu.matmul %90, %32, %cst_31 {dimension_numbers = #tpu.dot_dimension_numbers<[1], [0], [0], [1], [0, 0, 1, 1], [], []>} : vector<2x32xf32>, vector<32x128xf32>, vector<2x128xf32> -> vector<2x128xf32>
    %93 = arith.addf %91, %92 : vector<2x128xf32>
    %94 = vector.extract_strided_slice %93 {offsets = [0, 0], sizes = [2, 32], strides = [1, 1]} : vector<2x128xf32> to vector<2x32xf32>
    %95 = arith.negf %94 : vector<2x32xf32>
    %96 = math.exp %95 : vector<2x32xf32>
    %cst_32 = arith.constant 1.000000e+00 : f32
    %97 = vector.broadcast %cst_32 : f32 to vector<2x32xf32>
    %98 = arith.addf %97, %96 : vector<2x32xf32>
    %99 = arith.divf %97, %98 : vector<2x32xf32>
    %100 = vector.extract_strided_slice %93 {offsets = [0, 32], sizes = [2, 32], strides = [1, 1]} : vector<2x128xf32> to vector<2x32xf32>
    %101 = arith.negf %100 : vector<2x32xf32>
    %102 = math.exp %101 : vector<2x32xf32>
    %cst_33 = arith.constant 1.000000e+00 : f32
    %103 = vector.broadcast %cst_33 : f32 to vector<2x32xf32>
    %104 = arith.addf %103, %102 : vector<2x32xf32>
    %105 = arith.divf %103, %104 : vector<2x32xf32>
    %106 = vector.extract_strided_slice %93 {offsets = [0, 64], sizes = [2, 32], strides = [1, 1]} : vector<2x128xf32> to vector<2x32xf32>
    %107 = math.tanh %106 : vector<2x32xf32>
    %108 = vector.extract_strided_slice %93 {offsets = [0, 96], sizes = [2, 32], strides = [1, 1]} : vector<2x128xf32> to vector<2x32xf32>
    %109 = arith.negf %108 : vector<2x32xf32>
    %110 = math.exp %109 : vector<2x32xf32>
    %cst_34 = arith.constant 1.000000e+00 : f32
    %111 = vector.broadcast %cst_34 : f32 to vector<2x32xf32>
    %112 = arith.addf %111, %110 : vector<2x32xf32>
    %113 = arith.divf %111, %112 : vector<2x32xf32>
    %114 = arith.mulf %105, %88 : vector<2x32xf32>
    %115 = arith.mulf %99, %107 : vector<2x32xf32>
    %116 = arith.addf %114, %115 : vector<2x32xf32>
    %117 = math.tanh %116 : vector<2x32xf32>
    %118 = arith.mulf %113, %117 : vector<2x32xf32>
    %119 = vector.extract_strided_slice %31 {offsets = [6, 0], sizes = [2, 128], strides = [1, 1]} : vector<16x128xf32> to vector<2x128xf32>
    %cst_35 = arith.constant dense<0.000000e+00> : vector<2x128xf32>
    %120 = tpu.matmul %118, %32, %cst_35 {dimension_numbers = #tpu.dot_dimension_numbers<[1], [0], [0], [1], [0, 0, 1, 1], [], []>} : vector<2x32xf32>, vector<32x128xf32>, vector<2x128xf32> -> vector<2x128xf32>
    %121 = arith.addf %119, %120 : vector<2x128xf32>
    %122 = vector.extract_strided_slice %121 {offsets = [0, 0], sizes = [2, 32], strides = [1, 1]} : vector<2x128xf32> to vector<2x32xf32>
    %123 = arith.negf %122 : vector<2x32xf32>
    %124 = math.exp %123 : vector<2x32xf32>
    %cst_36 = arith.constant 1.000000e+00 : f32
    %125 = vector.broadcast %cst_36 : f32 to vector<2x32xf32>
    %126 = arith.addf %125, %124 : vector<2x32xf32>
    %127 = arith.divf %125, %126 : vector<2x32xf32>
    %128 = vector.extract_strided_slice %121 {offsets = [0, 32], sizes = [2, 32], strides = [1, 1]} : vector<2x128xf32> to vector<2x32xf32>
    %129 = arith.negf %128 : vector<2x32xf32>
    %130 = math.exp %129 : vector<2x32xf32>
    %cst_37 = arith.constant 1.000000e+00 : f32
    %131 = vector.broadcast %cst_37 : f32 to vector<2x32xf32>
    %132 = arith.addf %131, %130 : vector<2x32xf32>
    %133 = arith.divf %131, %132 : vector<2x32xf32>
    %134 = vector.extract_strided_slice %121 {offsets = [0, 64], sizes = [2, 32], strides = [1, 1]} : vector<2x128xf32> to vector<2x32xf32>
    %135 = math.tanh %134 : vector<2x32xf32>
    %136 = vector.extract_strided_slice %121 {offsets = [0, 96], sizes = [2, 32], strides = [1, 1]} : vector<2x128xf32> to vector<2x32xf32>
    %137 = arith.negf %136 : vector<2x32xf32>
    %138 = math.exp %137 : vector<2x32xf32>
    %cst_38 = arith.constant 1.000000e+00 : f32
    %139 = vector.broadcast %cst_38 : f32 to vector<2x32xf32>
    %140 = arith.addf %139, %138 : vector<2x32xf32>
    %141 = arith.divf %139, %140 : vector<2x32xf32>
    %142 = arith.mulf %133, %116 : vector<2x32xf32>
    %143 = arith.mulf %127, %135 : vector<2x32xf32>
    %144 = arith.addf %142, %143 : vector<2x32xf32>
    %145 = math.tanh %144 : vector<2x32xf32>
    %146 = arith.mulf %141, %145 : vector<2x32xf32>
    %147 = vector.extract_strided_slice %31 {offsets = [8, 0], sizes = [2, 128], strides = [1, 1]} : vector<16x128xf32> to vector<2x128xf32>
    %cst_39 = arith.constant dense<0.000000e+00> : vector<2x128xf32>
    %148 = tpu.matmul %146, %32, %cst_39 {dimension_numbers = #tpu.dot_dimension_numbers<[1], [0], [0], [1], [0, 0, 1, 1], [], []>} : vector<2x32xf32>, vector<32x128xf32>, vector<2x128xf32> -> vector<2x128xf32>
    %149 = arith.addf %147, %148 : vector<2x128xf32>
    %150 = vector.extract_strided_slice %149 {offsets = [0, 0], sizes = [2, 32], strides = [1, 1]} : vector<2x128xf32> to vector<2x32xf32>
    %151 = arith.negf %150 : vector<2x32xf32>
    %152 = math.exp %151 : vector<2x32xf32>
    %cst_40 = arith.constant 1.000000e+00 : f32
    %153 = vector.broadcast %cst_40 : f32 to vector<2x32xf32>
    %154 = arith.addf %153, %152 : vector<2x32xf32>
    %155 = arith.divf %153, %154 : vector<2x32xf32>
    %156 = vector.extract_strided_slice %149 {offsets = [0, 32], sizes = [2, 32], strides = [1, 1]} : vector<2x128xf32> to vector<2x32xf32>
    %157 = arith.negf %156 : vector<2x32xf32>
    %158 = math.exp %157 : vector<2x32xf32>
    %cst_41 = arith.constant 1.000000e+00 : f32
    %159 = vector.broadcast %cst_41 : f32 to vector<2x32xf32>
    %160 = arith.addf %159, %158 : vector<2x32xf32>
    %161 = arith.divf %159, %160 : vector<2x32xf32>
    %162 = vector.extract_strided_slice %149 {offsets = [0, 64], sizes = [2, 32], strides = [1, 1]} : vector<2x128xf32> to vector<2x32xf32>
    %163 = math.tanh %162 : vector<2x32xf32>
    %164 = vector.extract_strided_slice %149 {offsets = [0, 96], sizes = [2, 32], strides = [1, 1]} : vector<2x128xf32> to vector<2x32xf32>
    %165 = arith.negf %164 : vector<2x32xf32>
    %166 = math.exp %165 : vector<2x32xf32>
    %cst_42 = arith.constant 1.000000e+00 : f32
    %167 = vector.broadcast %cst_42 : f32 to vector<2x32xf32>
    %168 = arith.addf %167, %166 : vector<2x32xf32>
    %169 = arith.divf %167, %168 : vector<2x32xf32>
    %170 = arith.mulf %161, %144 : vector<2x32xf32>
    %171 = arith.mulf %155, %163 : vector<2x32xf32>
    %172 = arith.addf %170, %171 : vector<2x32xf32>
    %173 = math.tanh %172 : vector<2x32xf32>
    %174 = arith.mulf %169, %173 : vector<2x32xf32>
    %175 = vector.extract_strided_slice %31 {offsets = [10, 0], sizes = [2, 128], strides = [1, 1]} : vector<16x128xf32> to vector<2x128xf32>
    %cst_43 = arith.constant dense<0.000000e+00> : vector<2x128xf32>
    %176 = tpu.matmul %174, %32, %cst_43 {dimension_numbers = #tpu.dot_dimension_numbers<[1], [0], [0], [1], [0, 0, 1, 1], [], []>} : vector<2x32xf32>, vector<32x128xf32>, vector<2x128xf32> -> vector<2x128xf32>
    %177 = arith.addf %175, %176 : vector<2x128xf32>
    %178 = vector.extract_strided_slice %177 {offsets = [0, 0], sizes = [2, 32], strides = [1, 1]} : vector<2x128xf32> to vector<2x32xf32>
    %179 = arith.negf %178 : vector<2x32xf32>
    %180 = math.exp %179 : vector<2x32xf32>
    %cst_44 = arith.constant 1.000000e+00 : f32
    %181 = vector.broadcast %cst_44 : f32 to vector<2x32xf32>
    %182 = arith.addf %181, %180 : vector<2x32xf32>
    %183 = arith.divf %181, %182 : vector<2x32xf32>
    %184 = vector.extract_strided_slice %177 {offsets = [0, 32], sizes = [2, 32], strides = [1, 1]} : vector<2x128xf32> to vector<2x32xf32>
    %185 = arith.negf %184 : vector<2x32xf32>
    %186 = math.exp %185 : vector<2x32xf32>
    %cst_45 = arith.constant 1.000000e+00 : f32
    %187 = vector.broadcast %cst_45 : f32 to vector<2x32xf32>
    %188 = arith.addf %187, %186 : vector<2x32xf32>
    %189 = arith.divf %187, %188 : vector<2x32xf32>
    %190 = vector.extract_strided_slice %177 {offsets = [0, 64], sizes = [2, 32], strides = [1, 1]} : vector<2x128xf32> to vector<2x32xf32>
    %191 = math.tanh %190 : vector<2x32xf32>
    %192 = vector.extract_strided_slice %177 {offsets = [0, 96], sizes = [2, 32], strides = [1, 1]} : vector<2x128xf32> to vector<2x32xf32>
    %193 = arith.negf %192 : vector<2x32xf32>
    %194 = math.exp %193 : vector<2x32xf32>
    %cst_46 = arith.constant 1.000000e+00 : f32
    %195 = vector.broadcast %cst_46 : f32 to vector<2x32xf32>
    %196 = arith.addf %195, %194 : vector<2x32xf32>
    %197 = arith.divf %195, %196 : vector<2x32xf32>
    %198 = arith.mulf %189, %172 : vector<2x32xf32>
    %199 = arith.mulf %183, %191 : vector<2x32xf32>
    %200 = arith.addf %198, %199 : vector<2x32xf32>
    %201 = math.tanh %200 : vector<2x32xf32>
    %202 = arith.mulf %197, %201 : vector<2x32xf32>
    %203 = vector.extract_strided_slice %31 {offsets = [12, 0], sizes = [2, 128], strides = [1, 1]} : vector<16x128xf32> to vector<2x128xf32>
    %cst_47 = arith.constant dense<0.000000e+00> : vector<2x128xf32>
    %204 = tpu.matmul %202, %32, %cst_47 {dimension_numbers = #tpu.dot_dimension_numbers<[1], [0], [0], [1], [0, 0, 1, 1], [], []>} : vector<2x32xf32>, vector<32x128xf32>, vector<2x128xf32> -> vector<2x128xf32>
    %205 = arith.addf %203, %204 : vector<2x128xf32>
    %206 = vector.extract_strided_slice %205 {offsets = [0, 0], sizes = [2, 32], strides = [1, 1]} : vector<2x128xf32> to vector<2x32xf32>
    %207 = arith.negf %206 : vector<2x32xf32>
    %208 = math.exp %207 : vector<2x32xf32>
    %cst_48 = arith.constant 1.000000e+00 : f32
    %209 = vector.broadcast %cst_48 : f32 to vector<2x32xf32>
    %210 = arith.addf %209, %208 : vector<2x32xf32>
    %211 = arith.divf %209, %210 : vector<2x32xf32>
    %212 = vector.extract_strided_slice %205 {offsets = [0, 32], sizes = [2, 32], strides = [1, 1]} : vector<2x128xf32> to vector<2x32xf32>
    %213 = arith.negf %212 : vector<2x32xf32>
    %214 = math.exp %213 : vector<2x32xf32>
    %cst_49 = arith.constant 1.000000e+00 : f32
    %215 = vector.broadcast %cst_49 : f32 to vector<2x32xf32>
    %216 = arith.addf %215, %214 : vector<2x32xf32>
    %217 = arith.divf %215, %216 : vector<2x32xf32>
    %218 = vector.extract_strided_slice %205 {offsets = [0, 64], sizes = [2, 32], strides = [1, 1]} : vector<2x128xf32> to vector<2x32xf32>
    %219 = math.tanh %218 : vector<2x32xf32>
    %220 = vector.extract_strided_slice %205 {offsets = [0, 96], sizes = [2, 32], strides = [1, 1]} : vector<2x128xf32> to vector<2x32xf32>
    %221 = arith.negf %220 : vector<2x32xf32>
    %222 = math.exp %221 : vector<2x32xf32>
    %cst_50 = arith.constant 1.000000e+00 : f32
    %223 = vector.broadcast %cst_50 : f32 to vector<2x32xf32>
    %224 = arith.addf %223, %222 : vector<2x32xf32>
    %225 = arith.divf %223, %224 : vector<2x32xf32>
    %226 = arith.mulf %217, %200 : vector<2x32xf32>
    %227 = arith.mulf %211, %219 : vector<2x32xf32>
    %228 = arith.addf %226, %227 : vector<2x32xf32>
    %229 = math.tanh %228 : vector<2x32xf32>
    %230 = arith.mulf %225, %229 : vector<2x32xf32>
    %231 = vector.extract_strided_slice %31 {offsets = [14, 0], sizes = [2, 128], strides = [1, 1]} : vector<16x128xf32> to vector<2x128xf32>
    %cst_51 = arith.constant dense<0.000000e+00> : vector<2x128xf32>
    %232 = tpu.matmul %230, %32, %cst_51 {dimension_numbers = #tpu.dot_dimension_numbers<[1], [0], [0], [1], [0, 0, 1, 1], [], []>} : vector<2x32xf32>, vector<32x128xf32>, vector<2x128xf32> -> vector<2x128xf32>
    %233 = arith.addf %231, %232 : vector<2x128xf32>
    %234 = vector.extract_strided_slice %233 {offsets = [0, 0], sizes = [2, 32], strides = [1, 1]} : vector<2x128xf32> to vector<2x32xf32>
    %235 = arith.negf %234 : vector<2x32xf32>
    %236 = math.exp %235 : vector<2x32xf32>
    %cst_52 = arith.constant 1.000000e+00 : f32
    %237 = vector.broadcast %cst_52 : f32 to vector<2x32xf32>
    %238 = arith.addf %237, %236 : vector<2x32xf32>
    %239 = arith.divf %237, %238 : vector<2x32xf32>
    %240 = vector.extract_strided_slice %233 {offsets = [0, 32], sizes = [2, 32], strides = [1, 1]} : vector<2x128xf32> to vector<2x32xf32>
    %241 = arith.negf %240 : vector<2x32xf32>
    %242 = math.exp %241 : vector<2x32xf32>
    %cst_53 = arith.constant 1.000000e+00 : f32
    %243 = vector.broadcast %cst_53 : f32 to vector<2x32xf32>
    %244 = arith.addf %243, %242 : vector<2x32xf32>
    %245 = arith.divf %243, %244 : vector<2x32xf32>
    %246 = vector.extract_strided_slice %233 {offsets = [0, 64], sizes = [2, 32], strides = [1, 1]} : vector<2x128xf32> to vector<2x32xf32>
    %247 = math.tanh %246 : vector<2x32xf32>
    %248 = vector.extract_strided_slice %233 {offsets = [0, 96], sizes = [2, 32], strides = [1, 1]} : vector<2x128xf32> to vector<2x32xf32>
    %249 = arith.negf %248 : vector<2x32xf32>
    %250 = math.exp %249 : vector<2x32xf32>
    %cst_54 = arith.constant 1.000000e+00 : f32
    %251 = vector.broadcast %cst_54 : f32 to vector<2x32xf32>
    %252 = arith.addf %251, %250 : vector<2x32xf32>
    %253 = arith.divf %251, %252 : vector<2x32xf32>
    %254 = arith.mulf %245, %228 : vector<2x32xf32>
    %255 = arith.mulf %239, %247 : vector<2x32xf32>
    %256 = arith.addf %254, %255 : vector<2x32xf32>
    %257 = math.tanh %256 : vector<2x32xf32>
    %258 = arith.mulf %253, %257 : vector<2x32xf32>
    %259 = tpu.concatenate %62, %90, %118, %146, %174, %202, %230, %258 in 0 : vector<2x32xf32>, vector<2x32xf32>, vector<2x32xf32>, vector<2x32xf32>, vector<2x32xf32>, vector<2x32xf32>, vector<2x32xf32>, vector<2x32xf32> -> vector<16x32xf32>
    %c0_55 = arith.constant 0 : index
    %c0_56 = arith.constant 0 : index
    %260 = vector.load %arg9[%c0_55, %c0_56] : memref<16x32xf32, #tpu.memory_space<vmem>>, vector<16x32xf32>
    tpu.vector_store %arg9[%c0_55, %c0_56], %259 {strides = array<i32>} : memref<16x32xf32, #tpu.memory_space<vmem>>, vector<16x32xf32>,
    return
  }
}

module attributes {stable_mosaic.version = 11 : i64} {
  func.func @kernel(%arg0: i32, %arg1: memref<1x2x8x32xf32, #tpu.memory_space<vmem>>, %arg2: memref<2x16x32xf32, #tpu.memory_space<vmem>>, %arg3: memref<1x32x32xf32, #tpu.memory_space<vmem>>, %arg4: memref<1x32x32xf32, #tpu.memory_space<vmem>>, %arg5: memref<1x1x32xf32, #tpu.memory_space<vmem>>, %arg6: memref<1x32x32xf32, #tpu.memory_space<vmem>>, %arg7: memref<1x1x32xf32, #tpu.memory_space<vmem>>, %arg8: memref<1x1x1x32xf32, #tpu.memory_space<vmem>>, %arg9: memref<1x1x1x32xf32, #tpu.memory_space<vmem>>, %arg10: memref<3xf32, #tpu.memory_space<smem>>, %arg11: memref<3xf32, #tpu.memory_space<smem>>, %arg12: memref<32x32xf32, #tpu.memory_space<vmem>>, %arg13: memref<1x32xf32, #tpu.memory_space<vmem>>, %arg14: memref<32x32xf32, #tpu.memory_space<vmem>>, %arg15: memref<32x32xf32, #tpu.memory_space<vmem>>, %arg16: memref<1x32xf32, #tpu.memory_space<vmem>>, %arg17: memref<32x32xf32, #tpu.memory_space<vmem>>, %arg18: memref<32x32xf32, #tpu.memory_space<vmem>>, %arg19: memref<1x32xf32, #tpu.memory_space<vmem>>, %arg20: memref<32x16xf32, #tpu.memory_space<vmem>>, %arg21: memref<1x16xf32, #tpu.memory_space<vmem>>, %arg22: memref<2x16xf32, #tpu.memory_space<vmem>>, %arg23: memref<2x32xf32, #tpu.memory_space<vmem>>) attributes {dimension_semantics = [#tpu.dimension_semantics<arbitrary>], iteration_bounds = array<i64: 3>, scalar_prefetch = 0 : i64, scratch_operands = 1 : i64, tpu.core_type = #tpu.core_type<tc>, window_params = [{transform_indices = @transform_0, window_bounds = array<i64: 1, 2, 8, 32>}, {pipeline_mode = #tpu.pipeline_mode<synchronous>, transform_indices = @transform_1, window_bounds = array<i64: 2, 16, 32>}, {transform_indices = @transform_2, window_bounds = array<i64: 1, 32, 32>}, {transform_indices = @transform_3, window_bounds = array<i64: 1, 32, 32>}, {transform_indices = @transform_4, window_bounds = array<i64: 1, 1, 32>}, {transform_indices = @transform_5, window_bounds = array<i64: 1, 32, 32>}, {transform_indices = @transform_6, window_bounds = array<i64: 1, 1, 32>}, {transform_indices = @transform_7, window_bounds = array<i64: 1, 1, 1, 32>}, {transform_indices = @transform_8, window_bounds = array<i64: 1, 1, 1, 32>}, {transform_indices = @transform_9, window_bounds = array<i64: 3>}, {transform_indices = @transform_10, window_bounds = array<i64: 3>}, {pipeline_mode = #tpu.pipeline_mode<synchronous>, transform_indices = @transform_11, window_bounds = array<i64: 32, 32>}, {pipeline_mode = #tpu.pipeline_mode<synchronous>, transform_indices = @transform_12, window_bounds = array<i64: 1, 32>}, {pipeline_mode = #tpu.pipeline_mode<synchronous>, transform_indices = @transform_13, window_bounds = array<i64: 32, 32>}, {pipeline_mode = #tpu.pipeline_mode<synchronous>, transform_indices = @transform_14, window_bounds = array<i64: 32, 32>}, {pipeline_mode = #tpu.pipeline_mode<synchronous>, transform_indices = @transform_15, window_bounds = array<i64: 1, 32>}, {pipeline_mode = #tpu.pipeline_mode<synchronous>, transform_indices = @transform_16, window_bounds = array<i64: 32, 32>}, {pipeline_mode = #tpu.pipeline_mode<synchronous>, transform_indices = @transform_17, window_bounds = array<i64: 32, 32>}, {pipeline_mode = #tpu.pipeline_mode<synchronous>, transform_indices = @transform_18, window_bounds = array<i64: 1, 32>}, {pipeline_mode = #tpu.pipeline_mode<synchronous>, transform_indices = @transform_19, window_bounds = array<i64: 32, 16>}, {pipeline_mode = #tpu.pipeline_mode<synchronous>, transform_indices = @transform_20, window_bounds = array<i64: 1, 16>}, {pipeline_mode = #tpu.pipeline_mode<synchronous>, transform_indices = @transform_21, window_bounds = array<i64: 2, 16>}]} {
    %c0 = arith.constant 0 : index
    %c0_0 = arith.constant 0 : index
    %c0_1 = arith.constant 0 : index
    %c0_2 = arith.constant 0 : index
    %0 = vector.load %arg1[%c0, %c0_0, %c0_1, %c0_2] : memref<1x2x8x32xf32, #tpu.memory_space<vmem>>, vector<1x2x8x32xf32>
    %1 = vector.shape_cast %0 : vector<1x2x8x32xf32> to vector<2x8x32xf32>
    %c0_3 = arith.constant 0 : index
    %c0_4 = arith.constant 0 : index
    %c0_5 = arith.constant 0 : index
    %2 = vector.load %arg2[%c0_3, %c0_4, %c0_5] : memref<2x16x32xf32, #tpu.memory_space<vmem>>, vector<2x16x32xf32>
    %3 = vector.shape_cast %1 : vector<2x8x32xf32> to vector<16x32xf32>
    %4 = vector.shape_cast %2 : vector<2x16x32xf32> to vector<32x32xf32>
    %c0_6 = arith.constant 0 : index
    %c0_7 = arith.constant 0 : index
    %c0_8 = arith.constant 0 : index
    %5 = vector.load %arg3[%c0_6, %c0_7, %c0_8] : memref<1x32x32xf32, #tpu.memory_space<vmem>>, vector<1x32x32xf32>
    %6 = vector.shape_cast %5 : vector<1x32x32xf32> to vector<32x32xf32>
    %cst = arith.constant dense<0.000000e+00> : vector<16x32xf32>
    %7 = tpu.matmul %3, %6, %cst {dimension_numbers = #tpu.dot_dimension_numbers<[1], [0], [0], [1], [0, 0, 1, 1], [], []>} : vector<16x32xf32>, vector<32x32xf32>, vector<16x32xf32> -> vector<16x32xf32>
    %8 = vector.shape_cast %7 : vector<16x32xf32> to vector<2x8x32xf32>
    %c0_9 = arith.constant 0 : index
    %c0_10 = arith.constant 0 : index
    %c0_11 = arith.constant 0 : index
    %9 = vector.load %arg4[%c0_9, %c0_10, %c0_11] : memref<1x32x32xf32, #tpu.memory_space<vmem>>, vector<1x32x32xf32>
    %10 = vector.shape_cast %9 : vector<1x32x32xf32> to vector<32x32xf32>
    %cst_12 = arith.constant dense<0.000000e+00> : vector<16x32xf32>
    %11 = tpu.matmul %3, %10, %cst_12 {dimension_numbers = #tpu.dot_dimension_numbers<[1], [0], [0], [1], [0, 0, 1, 1], [], []>} : vector<16x32xf32>, vector<32x32xf32>, vector<16x32xf32> -> vector<16x32xf32>
    %c0_13 = arith.constant 0 : index
    %c0_14 = arith.constant 0 : index
    %c0_15 = arith.constant 0 : index
    %12 = vector.load %arg5[%c0_13, %c0_14, %c0_15] : memref<1x1x32xf32, #tpu.memory_space<vmem>>, vector<1x1x32xf32>
    %13 = vector.shape_cast %12 : vector<1x1x32xf32> to vector<1x32xf32>
    %14 = vector.broadcast %13 : vector<1x32xf32> to vector<16x32xf32>
    %15 = arith.addf %11, %14 : vector<16x32xf32>
    %16 = vector.shape_cast %15 : vector<16x32xf32> to vector<2x8x32xf32>
    %c0_16 = arith.constant 0 : index
    %c0_17 = arith.constant 0 : index
    %c0_18 = arith.constant 0 : index
    %17 = vector.load %arg6[%c0_16, %c0_17, %c0_18] : memref<1x32x32xf32, #tpu.memory_space<vmem>>, vector<1x32x32xf32>
    %18 = vector.shape_cast %17 : vector<1x32x32xf32> to vector<32x32xf32>
    %cst_19 = arith.constant dense<0.000000e+00> : vector<32x32xf32>
    %19 = tpu.matmul %4, %18, %cst_19 {dimension_numbers = #tpu.dot_dimension_numbers<[1], [0], [0], [1], [0, 0, 1, 1], [], []>} : vector<32x32xf32>, vector<32x32xf32>, vector<32x32xf32> -> vector<32x32xf32>
    %c0_20 = arith.constant 0 : index
    %c0_21 = arith.constant 0 : index
    %c0_22 = arith.constant 0 : index
    %20 = vector.load %arg7[%c0_20, %c0_21, %c0_22] : memref<1x1x32xf32, #tpu.memory_space<vmem>>, vector<1x1x32xf32>
    %21 = vector.shape_cast %20 : vector<1x1x32xf32> to vector<1x32xf32>
    %22 = vector.broadcast %21 : vector<1x32xf32> to vector<32x32xf32>
    %23 = arith.addf %19, %22 : vector<32x32xf32>
    %24 = vector.shape_cast %23 : vector<32x32xf32> to vector<2x16x32xf32>
    "tpu.trace_start"() <{level = 10 : i32, message = "bth,bnh->btn"}> : () -> ()
    %cst_23 = arith.constant dense<0.000000e+00> : vector<2x8x16xf32>
    %25 = tpu.matmul %8, %2, %cst_23 {dimension_numbers = #tpu.dot_dimension_numbers<[2], [2], [1], [1], [0, 0, 0, 1, 1, 1], [0], [0]>} : vector<2x8x32xf32>, vector<2x16x32xf32>, vector<2x8x16xf32> -> vector<2x8x16xf32>
    "tpu.trace_stop"() : () -> ()
    %26 = math.tanh %25 : vector<2x8x16xf32>
    "tpu.trace_start"() <{level = 10 : i32, message = "bnh,bth->bnt"}> : () -> ()
    %cst_24 = arith.constant dense<0.000000e+00> : vector<2x16x8xf32>
    %27 = tpu.matmul %2, %8, %cst_24 {dimension_numbers = #tpu.dot_dimension_numbers<[2], [2], [1], [1], [0, 0, 0, 1, 1, 1], [0], [0]>} : vector<2x16x32xf32>, vector<2x8x32xf32>, vector<2x16x8xf32> -> vector<2x16x8xf32>
    "tpu.trace_stop"() : () -> ()
    %28 = math.tanh %27 : vector<2x16x8xf32>
    "tpu.trace_start"() <{level = 10 : i32, message = "bnt,bth->bnh"}> : () -> ()
    %cst_25 = arith.constant dense<0.000000e+00> : vector<2x16x32xf32>
    %29 = tpu.matmul %28, %16, %cst_25 {dimension_numbers = #tpu.dot_dimension_numbers<[2], [1], [1], [2], [0, 0, 0, 1, 1, 2], [0], [0]>} : vector<2x16x8xf32>, vector<2x8x32xf32>, vector<2x16x32xf32> -> vector<2x16x32xf32>
    "tpu.trace_stop"() : () -> ()
    %30 = arith.addf %24, %29 : vector<2x16x32xf32>
    %31 = math.tanh %30 : vector<2x16x32xf32>
    "tpu.trace_start"() <{level = 10 : i32, message = "btn,bnh->bth"}> : () -> ()
    %cst_26 = arith.constant dense<0.000000e+00> : vector<2x8x32xf32>
    %32 = tpu.matmul %26, %24, %cst_26 {dimension_numbers = #tpu.dot_dimension_numbers<[2], [1], [1], [2], [0, 0, 0, 1, 1, 2], [0], [0]>} : vector<2x8x16xf32>, vector<2x16x32xf32>, vector<2x8x32xf32> -> vector<2x8x32xf32>
    "tpu.trace_stop"() : () -> ()
    %33 = arith.addf %16, %32 : vector<2x8x32xf32>
    %34 = math.tanh %33 : vector<2x8x32xf32>
    %c0_27 = arith.constant 0 : index
    %c0_28 = arith.constant 0 : index
    %c0_29 = arith.constant 0 : index
    %c0_30 = arith.constant 0 : index
    %35 = vector.load %arg9[%c0_27, %c0_28, %c0_29, %c0_30] : memref<1x1x1x32xf32, #tpu.memory_space<vmem>>, vector<1x1x1x32xf32>
    %36 = vector.shape_cast %35 : vector<1x1x1x32xf32> to vector<1x1x32xf32>
    %37 = vector.broadcast %36 : vector<1x1x32xf32> to vector<2x16x32xf32>
    %38 = arith.mulf %31, %37 : vector<2x16x32xf32>
    %cst_31 = arith.constant dense<0.000000e+00> : vector<2x16xf32>
    %39 = vector.multi_reduction <add>, %38, %cst_31 [2] : vector<2x16x32xf32> to vector<2x16xf32>
    %40 = vector.shape_cast %39 : vector<2x16xf32> to vector<2x16x1xf32>
    %41 = arith.index_cast %arg0 : i32 to index
    %42 = memref.load %arg11[%41] : memref<3xf32, #tpu.memory_space<smem>>
    %43 = vector.broadcast %42 : f32 to vector<2x16x1xf32>
    %44 = arith.addf %40, %43 : vector<2x16x1xf32>
    %c0_32 = arith.constant 0 : index
    %c0_33 = arith.constant 0 : index
    %c0_34 = arith.constant 0 : index
    %c0_35 = arith.constant 0 : index
    %45 = vector.load %arg8[%c0_32, %c0_33, %c0_34, %c0_35] : memref<1x1x1x32xf32, #tpu.memory_space<vmem>>, vector<1x1x1x32xf32>
    %46 = vector.shape_cast %45 : vector<1x1x1x32xf32> to vector<1x1x32xf32>
    %47 = vector.broadcast %46 : vector<1x1x32xf32> to vector<2x8x32xf32>
    %48 = arith.mulf %34, %47 : vector<2x8x32xf32>
    %cst_36 = arith.constant dense<0.000000e+00> : vector<2x8xf32>
    %49 = vector.multi_reduction <add>, %48, %cst_36 [2] : vector<2x8x32xf32> to vector<2x8xf32>
    %50 = vector.shape_cast %49 : vector<2x8xf32> to vector<2x8x1xf32>
    %51 = arith.index_cast %arg0 : i32 to index
    %52 = memref.load %arg10[%51] : memref<3xf32, #tpu.memory_space<smem>>
    %53 = vector.broadcast %52 : f32 to vector<2x8x1xf32>
    %54 = arith.addf %50, %53 : vector<2x8x1xf32>
    %cst_37 = arith.constant dense<0xFF800000> : vector<2x1xf32>
    %55 = vector.multi_reduction <maximumf>, %44, %cst_37 [1] : vector<2x16x1xf32> to vector<2x1xf32>
    %56 = vector.shape_cast %55 : vector<2x1xf32> to vector<2x1x1xf32>
    %57 = vector.broadcast %56 : vector<2x1x1xf32> to vector<2x16x1xf32>
    %58 = arith.subf %44, %57 : vector<2x16x1xf32>
    %59 = math.exp %58 : vector<2x16x1xf32>
    %cst_38 = arith.constant dense<0.000000e+00> : vector<2x1xf32>
    %60 = vector.multi_reduction <add>, %59, %cst_38 [1] : vector<2x16x1xf32> to vector<2x1xf32>
    %61 = vector.shape_cast %60 : vector<2x1xf32> to vector<2x1x1xf32>
    %62 = vector.broadcast %61 : vector<2x1x1xf32> to vector<2x16x1xf32>
    %63 = arith.divf %59, %62 : vector<2x16x1xf32>
    %64 = vector.broadcast %63 : vector<2x16x1xf32> to vector<2x16x32xf32>
    %65 = arith.mulf %2, %64 : vector<2x16x32xf32>
    %cst_39 = arith.constant dense<0.000000e+00> : vector<2x32xf32>
    %66 = vector.multi_reduction <add>, %65, %cst_39 [1] : vector<2x16x32xf32> to vector<2x32xf32>
    %cst_40 = arith.constant dense<0xFF800000> : vector<2x1xf32>
    %67 = vector.multi_reduction <maximumf>, %54, %cst_40 [1] : vector<2x8x1xf32> to vector<2x1xf32>
    %68 = vector.shape_cast %67 : vector<2x1xf32> to vector<2x1x1xf32>
    %69 = vector.broadcast %68 : vector<2x1x1xf32> to vector<2x8x1xf32>
    %70 = arith.subf %54, %69 : vector<2x8x1xf32>
    %71 = math.exp %70 : vector<2x8x1xf32>
    %cst_41 = arith.constant dense<0.000000e+00> : vector<2x1xf32>
    %72 = vector.multi_reduction <add>, %71, %cst_41 [1] : vector<2x8x1xf32> to vector<2x1xf32>
    %73 = vector.shape_cast %72 : vector<2x1xf32> to vector<2x1x1xf32>
    %74 = vector.broadcast %73 : vector<2x1x1xf32> to vector<2x8x1xf32>
    %75 = arith.divf %71, %74 : vector<2x8x1xf32>
    %76 = vector.broadcast %75 : vector<2x8x1xf32> to vector<2x8x32xf32>
    %77 = arith.mulf %1, %76 : vector<2x8x32xf32>
    %cst_42 = arith.constant dense<0.000000e+00> : vector<2x32xf32>
    %78 = vector.multi_reduction <add>, %77, %cst_42 [1] : vector<2x8x32xf32> to vector<2x32xf32>
    %79 = arith.addf %66, %78 : vector<2x32xf32>
    %c0_i32 = arith.constant 0 : i32
    %80 = arith.cmpi eq, %arg0, %c0_i32 : i32
    %81 = arith.extui %80 : i1 to i32
    %c0_i32_43 = arith.constant 0 : i32
    %82 = arith.cmpi ne, %81, %c0_i32_43 : i32
    scf.if %82 {
      %c0_46 = arith.constant 0 : index
      %c0_47 = arith.constant 0 : index
      %89 = vector.load %arg12[%c0_46, %c0_47] : memref<32x32xf32, #tpu.memory_space<vmem>>, vector<32x32xf32>
      %cst_48 = arith.constant dense<0.000000e+00> : vector<2x32xf32>
      %90 = tpu.matmul %79, %89, %cst_48 {dimension_numbers = #tpu.dot_dimension_numbers<[1], [0], [0], [1], [0, 0, 1, 1], [], []>} : vector<2x32xf32>, vector<32x32xf32>, vector<2x32xf32> -> vector<2x32xf32>
      %c0_49 = arith.constant 0 : index
      %c0_50 = arith.constant 0 : index
      %91 = vector.load %arg13[%c0_49, %c0_50] : memref<1x32xf32, #tpu.memory_space<vmem>>, vector<1x32xf32>
      %92 = vector.broadcast %91 : vector<1x32xf32> to vector<2x32xf32>
      %93 = arith.addf %90, %92 : vector<2x32xf32>
      %94 = math.tanh %93 : vector<2x32xf32>
      %c0_51 = arith.constant 0 : index
      %c0_52 = arith.constant 0 : index
      %95 = vector.load %arg23[%c0_51, %c0_52] : memref<2x32xf32, #tpu.memory_space<vmem>>, vector<2x32xf32>
      tpu.vector_store %arg23[%c0_51, %c0_52], %94 {strides = array<i32>} : memref<2x32xf32, #tpu.memory_space<vmem>>, vector<2x32xf32>,
    } else {
    }
    %c1_i32 = arith.constant 1 : i32
    %83 = arith.cmpi eq, %arg0, %c1_i32 : i32
    %84 = arith.extui %83 : i1 to i32
    %c0_i32_44 = arith.constant 0 : i32
    %85 = arith.cmpi ne, %84, %c0_i32_44 : i32
    scf.if %85 {
      %c0_46 = arith.constant 0 : index
      %c0_47 = arith.constant 0 : index
      %89 = vector.load %arg14[%c0_46, %c0_47] : memref<32x32xf32, #tpu.memory_space<vmem>>, vector<32x32xf32>
      %cst_48 = arith.constant dense<0.000000e+00> : vector<2x32xf32>
      %90 = tpu.matmul %79, %89, %cst_48 {dimension_numbers = #tpu.dot_dimension_numbers<[1], [0], [0], [1], [0, 0, 1, 1], [], []>} : vector<2x32xf32>, vector<32x32xf32>, vector<2x32xf32> -> vector<2x32xf32>
      %c0_49 = arith.constant 0 : index
      %c0_50 = arith.constant 0 : index
      %91 = vector.load %arg23[%c0_49, %c0_50] : memref<2x32xf32, #tpu.memory_space<vmem>>, vector<2x32xf32>
      %c0_51 = arith.constant 0 : index
      %c0_52 = arith.constant 0 : index
      %92 = vector.load %arg15[%c0_51, %c0_52] : memref<32x32xf32, #tpu.memory_space<vmem>>, vector<32x32xf32>
      %cst_53 = arith.constant dense<0.000000e+00> : vector<2x32xf32>
      %93 = tpu.matmul %91, %92, %cst_53 {dimension_numbers = #tpu.dot_dimension_numbers<[1], [0], [0], [1], [0, 0, 1, 1], [], []>} : vector<2x32xf32>, vector<32x32xf32>, vector<2x32xf32> -> vector<2x32xf32>
      %94 = arith.addf %90, %93 : vector<2x32xf32>
      %c0_54 = arith.constant 0 : index
      %c0_55 = arith.constant 0 : index
      %95 = vector.load %arg16[%c0_54, %c0_55] : memref<1x32xf32, #tpu.memory_space<vmem>>, vector<1x32xf32>
      %96 = vector.broadcast %95 : vector<1x32xf32> to vector<2x32xf32>
      %97 = arith.addf %94, %96 : vector<2x32xf32>
      %98 = math.tanh %97 : vector<2x32xf32>
      %c0_56 = arith.constant 0 : index
      %c0_57 = arith.constant 0 : index
      %99 = vector.load %arg23[%c0_56, %c0_57] : memref<2x32xf32, #tpu.memory_space<vmem>>, vector<2x32xf32>
      tpu.vector_store %arg23[%c0_56, %c0_57], %98 {strides = array<i32>} : memref<2x32xf32, #tpu.memory_space<vmem>>, vector<2x32xf32>,
    } else {
    }
    %c2_i32 = arith.constant 2 : i32
    %86 = arith.cmpi eq, %arg0, %c2_i32 : i32
    %87 = arith.extui %86 : i1 to i32
    %c0_i32_45 = arith.constant 0 : i32
    %88 = arith.cmpi ne, %87, %c0_i32_45 : i32
    scf.if %88 {
      %c0_46 = arith.constant 0 : index
      %c0_47 = arith.constant 0 : index
      %89 = vector.load %arg17[%c0_46, %c0_47] : memref<32x32xf32, #tpu.memory_space<vmem>>, vector<32x32xf32>
      %cst_48 = arith.constant dense<0.000000e+00> : vector<2x32xf32>
      %90 = tpu.matmul %79, %89, %cst_48 {dimension_numbers = #tpu.dot_dimension_numbers<[1], [0], [0], [1], [0, 0, 1, 1], [], []>} : vector<2x32xf32>, vector<32x32xf32>, vector<2x32xf32> -> vector<2x32xf32>
      %c0_49 = arith.constant 0 : index
      %c0_50 = arith.constant 0 : index
      %91 = vector.load %arg23[%c0_49, %c0_50] : memref<2x32xf32, #tpu.memory_space<vmem>>, vector<2x32xf32>
      %c0_51 = arith.constant 0 : index
      %c0_52 = arith.constant 0 : index
      %92 = vector.load %arg18[%c0_51, %c0_52] : memref<32x32xf32, #tpu.memory_space<vmem>>, vector<32x32xf32>
      %cst_53 = arith.constant dense<0.000000e+00> : vector<2x32xf32>
      %93 = tpu.matmul %91, %92, %cst_53 {dimension_numbers = #tpu.dot_dimension_numbers<[1], [0], [0], [1], [0, 0, 1, 1], [], []>} : vector<2x32xf32>, vector<32x32xf32>, vector<2x32xf32> -> vector<2x32xf32>
      %94 = arith.addf %90, %93 : vector<2x32xf32>
      %c0_54 = arith.constant 0 : index
      %c0_55 = arith.constant 0 : index
      %95 = vector.load %arg19[%c0_54, %c0_55] : memref<1x32xf32, #tpu.memory_space<vmem>>, vector<1x32xf32>
      %96 = vector.broadcast %95 : vector<1x32xf32> to vector<2x32xf32>
      %97 = arith.addf %94, %96 : vector<2x32xf32>
      %98 = math.tanh %97 : vector<2x32xf32>
      %c0_56 = arith.constant 0 : index
      %c0_57 = arith.constant 0 : index
      %99 = vector.load %arg20[%c0_56, %c0_57] : memref<32x16xf32, #tpu.memory_space<vmem>>, vector<32x16xf32>
      %cst_58 = arith.constant dense<0.000000e+00> : vector<2x16xf32>
      %100 = tpu.matmul %98, %99, %cst_58 {dimension_numbers = #tpu.dot_dimension_numbers<[1], [0], [0], [1], [0, 0, 1, 1], [], []>} : vector<2x32xf32>, vector<32x16xf32>, vector<2x16xf32> -> vector<2x16xf32>
      %c0_59 = arith.constant 0 : index
      %c0_60 = arith.constant 0 : index
      %101 = vector.load %arg21[%c0_59, %c0_60] : memref<1x16xf32, #tpu.memory_space<vmem>>, vector<1x16xf32>
      %102 = vector.broadcast %101 : vector<1x16xf32> to vector<2x16xf32>
      %103 = arith.addf %100, %102 : vector<2x16xf32>
      %c0_61 = arith.constant 0 : index
      %c0_62 = arith.constant 0 : index
      %104 = vector.load %arg22[%c0_61, %c0_62] : memref<2x16xf32, #tpu.memory_space<vmem>>, vector<2x16xf32>
      tpu.vector_store %arg22[%c0_61, %c0_62], %103 {strides = array<i32>} : memref<2x16xf32, #tpu.memory_space<vmem>>, vector<2x16xf32>,
    } else {
    }
    return
  }
  func.func @transform_0(%arg0: i32) -> (i32, i32, i32, i32) {
    %c0_i32 = arith.constant 0 : i32
    %c0_i32_0 = arith.constant 0 : i32
    %c0_i32_1 = arith.constant 0 : i32
    %c0_i32_2 = arith.constant 0 : i32
    return %arg0, %c0_i32, %c0_i32_0, %c0_i32_1 : i32, i32, i32, i32
  }
  func.func @transform_1(%arg0: i32) -> (i32, i32, i32) {
    %c0_i32 = arith.constant 0 : i32
    %c0_i32_0 = arith.constant 0 : i32
    %c0_i32_1 = arith.constant 0 : i32
    %c0_i32_2 = arith.constant 0 : i32
    return %c0_i32, %c0_i32_0, %c0_i32_1 : i32, i32, i32
  }
  func.func @transform_2(%arg0: i32) -> (i32, i32, i32) {
    %c0_i32 = arith.constant 0 : i32
    %c0_i32_0 = arith.constant 0 : i32
    %c0_i32_1 = arith.constant 0 : i32
    return %arg0, %c0_i32, %c0_i32_0 : i32, i32, i32
  }
  func.func @transform_3(%arg0: i32) -> (i32, i32, i32) {
    %c0_i32 = arith.constant 0 : i32
    %c0_i32_0 = arith.constant 0 : i32
    %c0_i32_1 = arith.constant 0 : i32
    return %arg0, %c0_i32, %c0_i32_0 : i32, i32, i32
  }
  func.func @transform_4(%arg0: i32) -> (i32, i32, i32) {
    %c0_i32 = arith.constant 0 : i32
    %c0_i32_0 = arith.constant 0 : i32
    %c0_i32_1 = arith.constant 0 : i32
    return %arg0, %c0_i32, %c0_i32_0 : i32, i32, i32
  }
  func.func @transform_5(%arg0: i32) -> (i32, i32, i32) {
    %c0_i32 = arith.constant 0 : i32
    %c0_i32_0 = arith.constant 0 : i32
    %c0_i32_1 = arith.constant 0 : i32
    return %arg0, %c0_i32, %c0_i32_0 : i32, i32, i32
  }
  func.func @transform_6(%arg0: i32) -> (i32, i32, i32) {
    %c0_i32 = arith.constant 0 : i32
    %c0_i32_0 = arith.constant 0 : i32
    %c0_i32_1 = arith.constant 0 : i32
    return %arg0, %c0_i32, %c0_i32_0 : i32, i32, i32
  }
  func.func @transform_7(%arg0: i32) -> (i32, i32, i32, i32) {
    %c0_i32 = arith.constant 0 : i32
    %c0_i32_0 = arith.constant 0 : i32
    %c0_i32_1 = arith.constant 0 : i32
    %c0_i32_2 = arith.constant 0 : i32
    return %arg0, %c0_i32, %c0_i32_0, %c0_i32_1 : i32, i32, i32, i32
  }
  func.func @transform_8(%arg0: i32) -> (i32, i32, i32, i32) {
    %c0_i32 = arith.constant 0 : i32
    %c0_i32_0 = arith.constant 0 : i32
    %c0_i32_1 = arith.constant 0 : i32
    %c0_i32_2 = arith.constant 0 : i32
    return %arg0, %c0_i32, %c0_i32_0, %c0_i32_1 : i32, i32, i32, i32
  }
  func.func @transform_9(%arg0: i32) -> i32 {
    %c0_i32 = arith.constant 0 : i32
    %c0_i32_0 = arith.constant 0 : i32
    return %c0_i32 : i32
  }
  func.func @transform_10(%arg0: i32) -> i32 {
    %c0_i32 = arith.constant 0 : i32
    %c0_i32_0 = arith.constant 0 : i32
    return %c0_i32 : i32
  }
  func.func @transform_11(%arg0: i32) -> (i32, i32) {
    %c0_i32 = arith.constant 0 : i32
    %c0_i32_0 = arith.constant 0 : i32
    %c0_i32_1 = arith.constant 0 : i32
    return %c0_i32, %c0_i32_0 : i32, i32
  }
  func.func @transform_12(%arg0: i32) -> (i32, i32) {
    %c0_i32 = arith.constant 0 : i32
    %c0_i32_0 = arith.constant 0 : i32
    %c0_i32_1 = arith.constant 0 : i32
    return %c0_i32, %c0_i32_0 : i32, i32
  }
  func.func @transform_13(%arg0: i32) -> (i32, i32) {
    %c0_i32 = arith.constant 0 : i32
    %c0_i32_0 = arith.constant 0 : i32
    %c0_i32_1 = arith.constant 0 : i32
    return %c0_i32, %c0_i32_0 : i32, i32
  }
  func.func @transform_14(%arg0: i32) -> (i32, i32) {
    %c0_i32 = arith.constant 0 : i32
    %c0_i32_0 = arith.constant 0 : i32
    %c0_i32_1 = arith.constant 0 : i32
    return %c0_i32, %c0_i32_0 : i32, i32
  }
  func.func @transform_15(%arg0: i32) -> (i32, i32) {
    %c0_i32 = arith.constant 0 : i32
    %c0_i32_0 = arith.constant 0 : i32
    %c0_i32_1 = arith.constant 0 : i32
    return %c0_i32, %c0_i32_0 : i32, i32
  }
  func.func @transform_16(%arg0: i32) -> (i32, i32) {
    %c0_i32 = arith.constant 0 : i32
    %c0_i32_0 = arith.constant 0 : i32
    %c0_i32_1 = arith.constant 0 : i32
    return %c0_i32, %c0_i32_0 : i32, i32
  }
  func.func @transform_17(%arg0: i32) -> (i32, i32) {
    %c0_i32 = arith.constant 0 : i32
    %c0_i32_0 = arith.constant 0 : i32
    %c0_i32_1 = arith.constant 0 : i32
    return %c0_i32, %c0_i32_0 : i32, i32
  }
  func.func @transform_18(%arg0: i32) -> (i32, i32) {
    %c0_i32 = arith.constant 0 : i32
    %c0_i32_0 = arith.constant 0 : i32
    %c0_i32_1 = arith.constant 0 : i32
    return %c0_i32, %c0_i32_0 : i32, i32
  }
  func.func @transform_19(%arg0: i32) -> (i32, i32) {
    %c0_i32 = arith.constant 0 : i32
    %c0_i32_0 = arith.constant 0 : i32
    %c0_i32_1 = arith.constant 0 : i32
    return %c0_i32, %c0_i32_0 : i32, i32
  }
  func.func @transform_20(%arg0: i32) -> (i32, i32) {
    %c0_i32 = arith.constant 0 : i32
    %c0_i32_0 = arith.constant 0 : i32
    %c0_i32_1 = arith.constant 0 : i32
    return %c0_i32, %c0_i32_0 : i32, i32
  }
  func.func @transform_21(%arg0: i32) -> (i32, i32) {
    %c0_i32 = arith.constant 0 : i32
    %c0_i32_0 = arith.constant 0 : i32
    %c0_i32_1 = arith.constant 0 : i32
    return %c0_i32, %c0_i32_0 : i32, i32
  }
}

</mosaic_0001>

<bundles_post_ra>
// kernel: coattention_forward.2
= control target key start
LH: loop header
LB: loop body
LE: loop exit
PB: predicated region body
PF: predicated region fallthrough
CT: control target
= control target key end

     0   :  { %vm58_vm0 = vcmask 261120   ;;  %vm35_vm1 = vcmask 1041408   ;;  %vm41_vm2 = vcmask 1045504   ;;  %s1689_s13 = smov 64   ;;  %s1690_s16 = smov 96   ;;  %v1691_v51 = vmov 0.0|0.0   ;;  %s1972_s1 = inlined_call_operand.vmem [shape: f32[32,96], index: 1, kind: input, shape index: {}]   ;;  %s1973_s3 = inlined_call_operand.vmem [shape: f32[32,64], index: 3, kind: input, shape index: {}]   ;;  %s1974_s0 = inlined_call_operand.vmem [shape: f32[16,32], index: 0, kind: input, shape index: {}]   ;;  %s1975_s4 = inlined_call_operand.vmem [shape: f32[32,32], index: 4, kind: input, shape index: {}]   ;;  %s1976_s2 = inlined_call_operand.vmem [shape: f32[1,96], index: 2, kind: input, shape index: {}]   ;;  %s1977_s5 = inlined_call_operand.vmem [shape: f32[32,128], index: 5, kind: input, shape index: {}]   ;;  %s1978_s6 = inlined_call_operand.vmem [shape: f32[32,128], index: 6, kind: input, shape index: {}]   ;;  %s1979_s8 = inlined_call_operand.vmem [shape: f32[16,32], index: 8, kind: output, shape index: {0}]   ;;  %s1980_s7 = inlined_call_operand.vmem [shape: f32[1,128], index: 7, kind: input, shape index: {}]   ;;  %s1981_s9 = inlined_call_operand.vmem [shape: f32[16,32], index: 9, kind: output, shape index: {1}]  }
   0x1   :  { %v47_v0 = vld [vmem:[%s1972_s1] sm:$0xff]  ;;  %v48_v1 = vld [vmem:[%s1972_s1 + $0x8] sm:$0xff]  ;;  %v49_v5 = vld [vmem:[%s1972_s1 + $0x10] sm:$0xff]  ;;  %vm1692_vm3 = vmmov 0   ;;  %v1693_v58 = vmov 0.0   ;;  %vm1289_vm4 = vcmask 1043456  }
   0x2   :  { %v138_v2 = vld [vmem:[%s1973_s3] sm:$0xff]  ;;  %v1534_v3 = vpack.c.bf16 %v48_v1, %v47_v0  ;;  %v139_v4 = vld [vmem:[%s1973_s3 + $0x8] sm:$0xff]  ;;  %v50_v6 = vld [vmem:[%s1972_s1 + $0x18] sm:$0xff] }
   0x3   :  { %v1542_v7 = vpack.c.bf16 %v139_v4, %v138_v2  ;;  %v1538_v8 = vpack.c.bf16 %v50_v6, %v49_v5  ;;  %v140_v9 = vld [vmem:[%s1973_s3 + $0x10] sm:$0xff]  ;;  %v141_v10 = vld [vmem:[%s1973_s3 + $0x18] sm:$0xff]  ;;  %v31_v11 = vld [vmem:[%s1974_s0] sm:$0xff] }
   0x4   :  { %1535 = vmatprep.subr.bf16.mxu0 %v1534_v3  ;;  %v1546_v12 = vpack.c.bf16 %v141_v10, %v140_v9  ;;  %1410 = vmatprep.mubr.msk.f32.mxu0 %vm58_vm0, %v31_v11  ;;  %v36_v13 = vrot.slane %v31_v11, 6  ;;  %v32_v14 = vld [vmem:[%s1974_s0 + $0x8] sm:$0xff]  ;;  %v222_v15 = vld [vmem:[%s1975_s4] sm:$0xff]  ;;  %v42_v20 = vrot.slane %v31_v11, 2  ;;  %v224_v22 = vld [vmem:[%s1975_s4 + $0x10] sm:$0xff] }
   0x5   :  { %v223_v16 = vld [vmem:[%s1975_s4 + $0x8] sm:$0xff]  ;;  %1543 = vmatprep.subr.bf16.mxu1 %v1542_v7  ;;  %1537 = vmatpush3.bf16.msra.mxu0 %v1534_v3  ;;  %v37_v18 = vrot.slane %v32_v14, 6  ;;  %v43_v21 = vrot.slane %v32_v14, 2  ;;  %v225_v23 = vld [vmem:[%s1975_s4 + $0x18] sm:$0xff]  ;;  %s1688_s4 = smov 32   ;;  %v350_v40 = vld [vmem:[%s1977_s5] sm:$0xff] }
   0x6   :  { %1545 = vmatpush3.bf16.msra.mxu1 %v1542_v7  ;;  %1539 = vmatprep.subr.bf16.mxu0 %v1538_v8  ;;  %v40_v17 = vsel %vm35_vm1, 0.0, %v36_v13  ;;  %v1550_v19 = vpack.c.bf16 %v223_v16, %v222_v15  ;;  %v1554_v25 = vpack.c.bf16 %v225_v23, %v224_v22  ;;  %v1313_v34 = vld [vmem:[%s1976_s2] ss:$0 sm:$0xff]  ;;  %v351_v41 = vld [vmem:[%s1977_s5 + $0x8] sm:$0xff]  ;;  %v352_v49 = vld [vmem:[%s1977_s5 + $0x10] sm:$0xff] }
   0x7   :  { %1547 = vmatprep.subr.bf16.mxu1 %v1546_v12  ;;  %1421 = vmatprep.mubr.msk.f32.mxu1 %vm58_vm0, %v40_v17  ;;  %v38_v24 = vsel %vm35_vm1, %v36_v13, %v37_v18  ;;  %v44_v26 = vsel %vm41_vm2, %v42_v20, %v43_v21  ;;  %v46_v27 = vsel %vm41_vm2, %v43_v21, 0.0  ;;  %v1558_v43 = vpack.c.bf16 %v351_v41, %v350_v40  ;;  %v442_v45 = vld [vmem:[%s1978_s6] sm:$0xff]  ;;  %v443_v46 = vld [vmem:[%s1978_s6 + $0x8] sm:$0xff]  ;;  %v353_v50 = vld [vmem:[%s1977_s5 + $0x18] sm:$0xff] }
   0x8   :  { %v1815_v48 = vpack.c.bf16 %v443_v46, %v442_v45  ;;  %v1562_v52 = vpack.c.bf16 %v353_v50, %v352_v49  ;;  %v444_v54 = vld [vmem:[%s1978_s6 + $0x10] sm:$0xff]  ;;  %v445_v55 = vld [vmem:[%s1978_s6 + $0x18] sm:$0xff]  ;;  %v1320_v7 = vld [vmem:[%s1980_s7] ss:$0 sm:$0xff] }
   0x9   :  { %1541 = vmatpush3.bf16.msra.mxu0 %v1538_v8  ;;  %v1833_v57 = vpack.c.bf16 %v445_v55, %v444_v54 }
   0xa   :  { %1549 = vmatpush3.bf16.msra.mxu1 %v1546_v12  ;;  %1551 = vmatprep.subr.bf16.mxu0 %v1550_v19 }
   0xb   :  { %1559 = vmatprep.subr.bf16.mxu1 %v1558_v43 }
   0xc   :  { %1411 = vmatmul.mubr.msk.f32.vlgmr.msra.gmra.mrb[0].mxu0 %vm58_vm0, %v32_v14 }
   0xd   :  { %1422 = vmatmul.mubr.msk.f32.vlgmr.msra.gmra.mrb[0].mxu1 %vm58_vm0, %v38_v24  ;;  %1553 = vmatpush3.bf16.msra.mxu0 %v1550_v19 }
   0xe   :  { %1555 = vmatprep.subr.bf16.mxu0 %v1554_v25  ;;  %1432 = vmatprep.mubr.msk.f32.mxu0 %vm58_vm0, %v44_v26 }
   0xf   :  { %1561 = vmatpush3.bf16.msra.mxu1 %v1558_v43 }
  0x10   :  { %1563 = vmatprep.subr.bf16.mxu1 %v1562_v52 }
  0x11   :  { %1557 = vmatpush3.bf16.msra.mxu0 %v1554_v25 }
  0x12   :  { %1566 = vmatprep.subr.bf16.mxu0 %v1691_v51 }
  0x13   :  { %1565 = vmatpush3.bf16.msra.mxu1 %v1562_v52 }
  0x14   :  { %1433 = vmatmul.mubr.msk.f32.vlgmr.msra.gmra.mrb[2].mxu0 %vm58_vm0, %v46_v27  ;;  %1572 = vmatprep.subr.bf16.mxu1 %v1691_v51 }
  0x15   :  { %1568 = vmatpush3.bf16.msra.mxu0 %v1815_v48  ;;  %1454 = vmatprep.mubr.msk.f32.mxu0 %vm1692_vm3, %v1693_v58 }
  0x16   :  { %1569 = vmatprep.subr.bf16.mxu0 %v1691_v51 }
  0x19   :  { %1571 = vmatpush3.bf16.msra.mxu0 %v1833_v57 }
  0x1a   :  { %1578 = vmatprep.subr.bf16.mxu0 %v1691_v51 }
  0x1c   :  { %1455 = vmatmul.mubr.f32.vlgmr.msra.gmra.mrb[4].mxu0 %v1693_v58 }
  0x1d   :  { %1580 = vmatpush3.bf16.msra.mxu0 %v1815_v48  ;;  %1476 = vmatprep.mubr.msk.f32.mxu0 %vm1692_vm3, %v1693_v58 }
  0x1e   :  { %1581 = vmatprep.subr.bf16.mxu0 %v1691_v51 }
  0x21   :  { %1583 = vmatpush3.bf16.msra.mxu0 %v1833_v57 }
  0x22   :  { %1590 = vmatprep.subr.bf16.mxu0 %v1691_v51 }
  0xdf   :  { %v1412_v28 = vpop.f32.mrb[0].mxu0 }
  0xe0   :  { %v1423_v29 = vpop.f32.mrb[0].mxu1  ;;  %v129_v30 = vpop.f32.mrb[1].mxu0  ;;  %v135_v38 = vadd.f32 %v1412_v28, %v1313_v34 }
  0xe1   :  { %v213_v31 = vpop.f32.mrb[1].mxu1  ;;  %v130_v35 = vadd.f32 %v1313_v34, %v129_v30 }
  0xe2   :  { %308 = vrot.lane.b32.xlu0 %v213_v31, %s1688_s4 }
  0xe6   :  { %310 = vrot.lane.b32.xlu0 %v1423_v29, %s1688_s4 }
  0xe7   :  { %v1434_v32 = vpop.f32.mrb[2].mxu0 }
  0xe8   :  { %v297_v33 = vpop.f32.mrb[3].mxu0 }
  0xe9   :  { %318 = vrot.lane.b32.xlu1 %v297_v33, %s1689_s13 }
  0xed   :  { %320 = vrot.lane.b32.xlu1 %v1434_v32, %s1689_s13 }
  0xef   :  { %v515_v5 = vpop.f32.mrb[4].mxu0 }
  0xf0   :  { %v1456_v6 = vpop.f32.mrb[5].mxu0 }
 0x154   :  { %v309_v36 = vpop.permute.xlu0 %308 }
 0x155   :  { %v314_v37 = vadd.f32 %v309_v36, %v130_v35 }
 0x157   :  { %328 = vrot.lane.b32.xlu0 %v314_v37, %s1690_s16 }
 0x158   :  { %v311_v39 = vpop.permute.xlu0 %310 }
 0x159   :  { %v315_v42 = vadd.f32 %v311_v39, %v135_v38 }
 0x15b   :  { %330 = vrot.lane.b32.xlu1 %v315_v42, %s1690_s16  ;;  %v319_v44 = vpop.permute.xlu1 %318 }
 0x15c   :  { %v324_v47 = vadd.f32 %v319_v44, %v314_v37 }
 0x15e   :  { %338 = vrot.lane.b32.xlu0 %v324_v47, %s1689_s13 }
 0x15f   :  { %v321_v53 = vpop.permute.xlu1 %320 }
 0x160   :  { %v325_v56 = vadd.f32 %v321_v53, %v315_v42 }
 0x162   :  { %340 = vrot.lane.b32.xlu1 %v325_v56, %s1689_s13 }
 0x1c9   :  { %v329_v59 = vpop.permute.xlu0 %328 }
 0x1ca   :  { %v334_v60 = vmax.f32 %v130_v35, %v329_v59 }
 0x1cd   :  { %v331_v61 = vpop.permute.xlu1 %330 }
 0x1ce   :  { %v335_v0 = vmax.f32 %v135_v38, %v331_v61 }
 0x1d0   :  { %v339_v62 = vpop.permute.xlu0 %338 }
 0x1d1   :  { %v344_v63 = vmax.f32 %v334_v60, %v339_v62 }
 0x1d3   :  { %1620 = vtanh.f32 %v344_v63 }
 0x1d4   :  { %v341_v1 = vpop.permute.xlu1 %340 }
 0x1d5   :  { %v345_v2 = vmax.f32 %v335_v0, %v341_v1 }
 0x1d7   :  { %1622 = vtanh.f32 %v345_v2 }
 0x1dd   :  { %v1621_v3 = vpop.eup %1620 }
 0x1de   :  { %348 = vst.msk [vmem:[%s1979_s8] sm:$0xff] %vm58_vm0, %v1621_v3  ;;  %1443 = vmatprep.mubr.msk.f32.mxu1 %vm58_vm0, %v1621_v3 }
 0x1e1   :  { %v1623_v4 = vpop.eup %1622 }
 0x1e2   :  { %349 = vst.msk [vmem:[%s1979_s8 + $0x8] sm:$0xff] %vm58_vm0, %v1623_v4  ;;  %1444 = vmatmul.mubr.msk.f32.vlgmr.msra.gmra.mrb[2].mxu1 %vm58_vm0, %v1623_v4 }
 0x1e3   :  { %1574 = vmatpush3.bf16.msra.mxu1 %v1815_v48  ;;  %1465 = vmatprep.mubr.msk.f32.mxu1 %vm1692_vm3, %v1693_v58 }
 0x1e4   :  { %1575 = vmatprep.subr.bf16.mxu1 %v1691_v51 }
 0x1e7   :  { %1577 = vmatpush3.bf16.msra.mxu1 %v1833_v57 }
 0x1e8   :  { %1584 = vmatprep.subr.bf16.mxu1 %v1691_v51 }
 0x2b5   :  { %v1445_v8 = vpop.f32.mrb[2].mxu1 }
 0x2b6   :  { %v1867_v9 = vadd.f32 %v1445_v8, %v1320_v7  ;;  %v433_v10 = vpop.f32.mrb[3].mxu1 }
 0x2b7   :  { %v1869_v11 = vadd.f32 %v1320_v7, %v433_v10 }
 0x2b9   :  { %v519_v12 = vadd.f32 %v515_v5, %v1869_v11 }
 0x2bb   :  { %1624 = vtanh.f32 %v519_v12  ;;  %v1323_v14 = vmul.f32 -1.442695, %v519_v12 }
 0x2bd   :  { %1626 = vpow2.f32 %v1323_v14 }
 0x2c5   :  { %v1625_v13 = vpop.eup %1624 }
 0x2c6   :  { %529 = vrot.lane.b32.xlu0 %v1625_v13, %s1689_s13 }
 0x2c7   :  { %v1627_v15 = vpop.eup %1626 }
 0x2c8   :  { %v523_v16 = vadd.f32 1.0, %v1627_v15 }
 0x2ca   :  { %1628 = vrcp.f32 %v523_v16 }
 0x2d4   :  { %v1629_v17 = vpop.eup %1628 }
 0x2d5   :  { %v527_v20 = vmul.f32 0.0, %v1629_v17 }
 0x338   :  { %v530_v18 = vpop.permute.xlu0 %529 }
 0x339   :  { %v532_v19 = vmul.f32 %v1629_v17, %v530_v18 }
 0x33b   :  { %534 = vrot.lane.b32.xlu1 %v532_v19, %s1688_s4 }
 0x3ad   :  { %v535_v21 = vpop.permute.xlu1 %534 }
 0x3ae   :  { %v537_v22 = vadd.f32 %v535_v21, %v527_v20 }
 0x3b0   :  { %1630 = vtanh.f32 %v537_v22  ;;  %v631_v38 = vrot.slane %v537_v22, 6 }
 0x3ba   :  { %v1631_v23 = vpop.eup %1630 }
 0x3bb   :  { %540 = vrot.lane.b32.xlu0 %v1631_v23, %s1689_s13 }
 0x42d   :  { %v541_v24 = vpop.permute.xlu0 %540 }
 0x42e   :  { %v1875_v25 = vmul.f32 %v1629_v17, %v541_v24 }
 0x430   :  { %545 = vrot.lane.b32.xlu1 %v1875_v25, %s1688_s4 }
 0x4a2   :  { %v546_v26 = vpop.permute.xlu1 %545 }
 0x4a3   :  { %1466 = vmatmul.mubr.msk.f32.vlgmr.msra.gmra.mrb[4].mxu1 %vm58_vm0, %v546_v26 }
 0x4a4   :  { %1586 = vmatpush3.bf16.msra.mxu1 %v1815_v48  ;;  %1487 = vmatprep.mubr.msk.f32.mxu1 %vm1692_vm3, %v1693_v58 }
 0x4a5   :  { %1587 = vmatprep.subr.bf16.mxu1 %v1691_v51 }
 0x4a8   :  { %1589 = vmatpush3.bf16.msra.mxu1 %v1833_v57 }
 0x4a9   :  { %1596 = vmatprep.subr.bf16.mxu1 %v1691_v51 }
 0x576   :  { %v615_v27 = vpop.f32.mrb[4].mxu1 }
 0x577   :  { %v620_v28 = vrot.slane %v615_v27, 6  ;;  %v1467_v29 = vpop.f32.mrb[5].mxu1 }
 0x579   :  { %v622_v30 = vadd.f32 %v620_v28, %v1869_v11 }
 0x57b   :  { %1632 = vtanh.f32 %v622_v30  ;;  %v1325_v32 = vmul.f32 -1.442695, %v622_v30 }
 0x57d   :  { %1634 = vpow2.f32 %v1325_v32 }
 0x585   :  { %v1633_v31 = vpop.eup %1632 }
 0x586   :  { %635 = vrot.lane.b32.xlu0 %v1633_v31, %s1689_s13 }
 0x587   :  { %v1635_v33 = vpop.eup %1634 }
 0x588   :  { %v626_v34 = vadd.f32 1.0, %v1635_v33 }
 0x58a   :  { %1636 = vrcp.f32 %v626_v34 }
 0x594   :  { %v1637_v35 = vpop.eup %1636 }
 0x595   :  { %v633_v39 = vmul.f32 %v1637_v35, %v631_v38 }
 0x5f8   :  { %v636_v36 = vpop.permute.xlu0 %635 }
 0x5f9   :  { %v638_v37 = vmul.f32 %v1637_v35, %v636_v36 }
 0x5fb   :  { %640 = vrot.lane.b32.xlu1 %v638_v37, %s1688_s4 }
 0x66d   :  { %v641_v40 = vpop.permute.xlu1 %640 }
 0x66e   :  { %v643_v41 = vadd.f32 %v641_v40, %v633_v39 }
 0x670   :  { %1638 = vtanh.f32 %v643_v41  ;;  %v738_v62 = vrot.slane %v643_v41, 6 }
 0x67a   :  { %v1639_v42 = vpop.eup %1638 }
 0x67b   :  { %646 = vrot.lane.b32.xlu0 %v1639_v42, %s1689_s13 }
 0x6ed   :  { %v647_v43 = vpop.permute.xlu0 %646 }
 0x6ee   :  { %v649_v44 = vmul.f32 %v1637_v35, %v647_v43 }
 0x6f0   :  { %v651_v45 = vrot.slane %v649_v44, 2  ;;  %v1288_v5 = vsel %vm35_vm1, %v1875_v25, %v649_v44 }
 0x6f2   :  { %652 = vrot.lane.b32.xlu1 %v651_v45, %s1688_s4 }
 0x764   :  { %v653_v46 = vpop.permute.xlu1 %652 }
 0x765   :  { %1477 = vmatmul.mubr.msk.f32.vlgmr.msra.gmra.mrb[6].mxu0 %vm58_vm0, %v653_v46 }
 0x766   :  { %1592 = vmatpush3.bf16.msra.mxu0 %v1815_v48  ;;  %1498 = vmatprep.mubr.msk.f32.mxu0 %vm1692_vm3, %v1693_v58 }
 0x767   :  { %1593 = vmatprep.subr.bf16.mxu0 %v1691_v51 }
 0x76a   :  { %1595 = vmatpush3.bf16.msra.mxu0 %v1833_v57 }
 0x76b   :  { %1602 = vmatprep.subr.bf16.mxu0 %v1691_v51 }
 0x838   :  { %v722_v47 = vpop.f32.mrb[6].mxu0 }
 0x839   :  { %v727_v49 = vrot.slane %v722_v47, 4  ;;  %v1478_v50 = vpop.f32.mrb[7].mxu0 }
 0x83b   :  { %v729_v52 = vadd.f32 %v727_v49, %v1869_v11 }
 0x83d   :  { %1640 = vtanh.f32 %v729_v52  ;;  %v1327_v54 = vmul.f32 -1.442695, %v729_v52 }
 0x83f   :  { %1642 = vpow2.f32 %v1327_v54 }
 0x847   :  { %v1641_v53 = vpop.eup %1640 }
 0x848   :  { %742 = vrot.lane.b32.xlu0 %v1641_v53, %s1689_s13 }
 0x849   :  { %v1643_v55 = vpop.eup %1642 }
 0x84a   :  { %v733_v56 = vadd.f32 1.0, %v1643_v55 }
 0x84c   :  { %1644 = vrcp.f32 %v733_v56 }
 0x856   :  { %v1645_v59 = vpop.eup %1644 }
 0x857   :  { %v740_v63 = vmul.f32 %v1645_v59, %v738_v62 }
 0x8ba   :  { %v743_v60 = vpop.permute.xlu0 %742 }
 0x8bb   :  { %v745_v61 = vmul.f32 %v1645_v59, %v743_v60 }
 0x8bd   :  { %747 = vrot.lane.b32.xlu1 %v745_v61, %s1688_s4 }
 0x92f   :  { %v748_v0 = vpop.permute.xlu1 %747 }
 0x930   :  { %v750_v1 = vadd.f32 %v748_v0, %v740_v63 }
 0x932   :  { %1646 = vtanh.f32 %v750_v1  ;;  %v845_v22 = vrot.slane %v750_v1, 6 }
 0x93c   :  { %v1647_v2 = vpop.eup %1646 }
 0x93d   :  { %753 = vrot.lane.b32.xlu0 %v1647_v2, %s1689_s13 }
 0x9af   :  { %v754_v3 = vpop.permute.xlu0 %753 }
 0x9b0   :  { %v756_v4 = vmul.f32 %v1645_v59, %v754_v3 }
 0x9b2   :  { %v758_v6 = vrot.slane %v756_v4, 4  ;;  %v1290_v7 = vsel %vm1289_vm4, %v1288_v5, %v756_v4 }
 0x9b4   :  { %759 = vrot.lane.b32.xlu1 %v758_v6, %s1688_s4 }
 0xa26   :  { %v760_v8 = vpop.permute.xlu1 %759 }
 0xa27   :  { %1488 = vmatmul.mubr.msk.f32.vlgmr.msra.gmra.mrb[6].mxu1 %vm58_vm0, %v760_v8 }
 0xa28   :  { %1598 = vmatpush3.bf16.msra.mxu1 %v1815_v48  ;;  %1509 = vmatprep.mubr.msk.f32.mxu1 %vm1692_vm3, %v1693_v58 }
 0xa29   :  { %1599 = vmatprep.subr.bf16.mxu1 %v1691_v51 }
 0xa2c   :  { %1601 = vmatpush3.bf16.msra.mxu1 %v1833_v57 }
 0xa2d   :  { %1608 = vmatprep.subr.bf16.mxu1 %v1691_v51 }
 0xafa   :  { %v829_v10 = vpop.f32.mrb[6].mxu1 }
 0xafb   :  { %v834_v12 = vrot.slane %v829_v10, 2  ;;  %v1489_v13 = vpop.f32.mrb[7].mxu1 }
 0xafd   :  { %v836_v14 = vadd.f32 %v834_v12, %v1869_v11 }
 0xaff   :  { %1648 = vtanh.f32 %v836_v14  ;;  %v1329_v16 = vmul.f32 -1.442695, %v836_v14 }
 0xb01   :  { %1650 = vpow2.f32 %v1329_v16 }
 0xb09   :  { %v1649_v15 = vpop.eup %1648 }
 0xb0a   :  { %849 = vrot.lane.b32.xlu0 %v1649_v15, %s1689_s13 }
 0xb0b   :  { %v1651_v17 = vpop.eup %1650 }
 0xb0c   :  { %v840_v18 = vadd.f32 1.0, %v1651_v17 }
 0xb0e   :  { %1652 = vrcp.f32 %v840_v18 }
 0xb18   :  { %v1653_v19 = vpop.eup %1652 }
 0xb19   :  { %v847_v23 = vmul.f32 %v1653_v19, %v845_v22 }
 0xb7c   :  { %v850_v20 = vpop.permute.xlu0 %849 }
 0xb7d   :  { %v852_v21 = vmul.f32 %v1653_v19, %v850_v20 }
 0xb7f   :  { %854 = vrot.lane.b32.xlu1 %v852_v21, %s1688_s4 }
 0xbf1   :  { %v855_v24 = vpop.permute.xlu1 %854 }
 0xbf2   :  { %v857_v25 = vadd.f32 %v855_v24, %v847_v23 }
 0xbf4   :  { %1654 = vtanh.f32 %v857_v25  ;;  %v949_v41 = vrot.slane %v857_v25, 6 }
 0xbfe   :  { %v1655_v11 = vpop.eup %1654 }
 0xbff   :  { %860 = vrot.lane.b32.xlu0 %v1655_v11, %s1689_s13 }
 0xc71   :  { %v861_v26 = vpop.permute.xlu0 %860 }
 0xc72   :  { %v863_v27 = vmul.f32 %v1653_v19, %v861_v26 }
 0xc74   :  { %v865_v28 = vrot.slane %v863_v27, 6  ;;  %v1918_v29 = vsel %vm41_vm2, %v1290_v7, %v863_v27 }
 0xc76   :  { %866 = vrot.lane.b32.xlu1 %v865_v28, %s1688_s4 }
 0xce8   :  { %v867_v30 = vpop.permute.xlu1 %866 }
 0xce9   :  { %1499 = vmatmul.mubr.msk.f32.vlgmr.msra.gmra.mrb[8].mxu0 %vm58_vm0, %v867_v30 }
 0xcea   :  { %1604 = vmatpush3.bf16.msra.mxu0 %v1815_v48  ;;  %1520 = vmatprep.mubr.msk.f32.mxu0 %vm1692_vm3, %v1693_v58 }
 0xceb   :  { %1605 = vmatprep.subr.bf16.mxu0 %v1691_v51 }
 0xcee   :  { %1607 = vmatpush3.bf16.msra.mxu0 %v1833_v57 }
 0xdbc   :  { %v936_v31 = vpop.f32.mrb[8].mxu0 }
 0xdbd   :  { %v940_v32 = vadd.f32 %v936_v31, %v1867_v9  ;;  %v1500_v33 = vpop.f32.mrb[9].mxu0 }
 0xdbf   :  { %1656 = vtanh.f32 %v940_v32  ;;  %v1331_v35 = vmul.f32 -1.442695, %v940_v32 }
 0xdc1   :  { %1658 = vpow2.f32 %v1331_v35 }
 0xdc9   :  { %v1657_v34 = vpop.eup %1656 }
 0xdca   :  { %953 = vrot.lane.b32.xlu0 %v1657_v34, %s1689_s13 }
 0xdcb   :  { %v1659_v36 = vpop.eup %1658 }
 0xdcc   :  { %v944_v37 = vadd.f32 1.0, %v1659_v36 }
 0xdce   :  { %1660 = vrcp.f32 %v944_v37 }
 0xdd8   :  { %v1661_v38 = vpop.eup %1660 }
 0xdd9   :  { %v951_v42 = vmul.f32 %v1661_v38, %v949_v41 }
 0xe3c   :  { %v954_v39 = vpop.permute.xlu0 %953 }
 0xe3d   :  { %v956_v40 = vmul.f32 %v1661_v38, %v954_v39 }
 0xe3f   :  { %958 = vrot.lane.b32.xlu1 %v956_v40, %s1688_s4 }
 0xeb1   :  { %v959_v43 = vpop.permute.xlu1 %958 }
 0xeb2   :  { %v961_v44 = vadd.f32 %v959_v43, %v951_v42 }
 0xeb4   :  { %1662 = vtanh.f32 %v961_v44 }
 0xebe   :  { %v1663_v45 = vpop.eup %1662 }
 0xebf   :  { %964 = vrot.lane.b32.xlu0 %v1663_v45, %s1689_s13 }
 0xf31   :  { %v965_v46 = vpop.permute.xlu0 %964 }
 0xf32   :  { %v1931_v47 = vmul.f32 %v1661_v38, %v965_v46 }
 0xf34   :  { %969 = vrot.lane.b32.xlu1 %v1931_v47, %s1688_s4 }
 0xfa6   :  { %v970_v49 = vpop.permute.xlu1 %969 }
 0xfa7   :  { %1510 = vmatmul.mubr.msk.f32.vlgmr.msra.gmra.mrb[8].mxu1 %vm58_vm0, %v970_v49 }
 0xfa8   :  { %1610 = vmatpush3.bf16.msra.mxu1 %v1815_v48  ;;  %1531 = vmatprep.mubr.msk.f32.mxu1 %vm1692_vm3, %v1693_v58 }
 0xfa9   :  { %1611 = vmatprep.subr.bf16.mxu1 %v1691_v51  ;;  %v1055_v51 = vrot.slane %v961_v44, 6 }
 0xfac   :  { %1613 = vmatpush3.bf16.msra.mxu1 %v1833_v57 }
0x107a   :  { %v1039_v50 = vpop.f32.mrb[8].mxu1 }
0x107b   :  { %v1044_v52 = vrot.slane %v1039_v50, 6  ;;  %v1511_v53 = vpop.f32.mrb[9].mxu1 }
0x107d   :  { %v1046_v54 = vadd.f32 %v1044_v52, %v1867_v9 }
0x107f   :  { %1664 = vtanh.f32 %v1046_v54  ;;  %v1333_v56 = vmul.f32 -1.442695, %v1046_v54 }
0x1081   :  { %1666 = vpow2.f32 %v1333_v56 }
0x1089   :  { %v1665_v55 = vpop.eup %1664 }
0x108a   :  { %1059 = vrot.lane.b32.xlu0 %v1665_v55, %s1689_s13 }
0x108b   :  { %v1667_v59 = vpop.eup %1666 }
0x108c   :  { %v1050_v48 = vadd.f32 1.0, %v1667_v59 }
0x108e   :  { %1668 = vrcp.f32 %v1050_v48 }
0x1098   :  { %v1669_v60 = vpop.eup %1668 }
0x1099   :  { %v1057_v57 = vmul.f32 %v1669_v60, %v1055_v51 }
0x10fc   :  { %v1060_v58 = vpop.permute.xlu0 %1059 }
0x10fd   :  { %v1062_v61 = vmul.f32 %v1669_v60, %v1060_v58 }
0x10ff   :  { %1064 = vrot.lane.b32.xlu1 %v1062_v61, %s1688_s4 }
0x1171   :  { %v1065_v62 = vpop.permute.xlu1 %1064 }
0x1172   :  { %v1067_v63 = vadd.f32 %v1065_v62, %v1057_v57 }
0x1174   :  { %1670 = vtanh.f32 %v1067_v63  ;;  %v1162_v18 = vrot.slane %v1067_v63, 6 }
0x117e   :  { %v1671_v0 = vpop.eup %1670 }
0x117f   :  { %1070 = vrot.lane.b32.xlu0 %v1671_v0, %s1689_s13 }
0x11f1   :  { %v1071_v1 = vpop.permute.xlu0 %1070 }
0x11f2   :  { %v1073_v2 = vmul.f32 %v1669_v60, %v1071_v1 }
0x11f4   :  { %v1075_v3 = vrot.slane %v1073_v2, 2  ;;  %v1292_v25 = vsel %vm35_vm1, %v1931_v47, %v1073_v2 }
0x11f6   :  { %1076 = vrot.lane.b32.xlu1 %v1075_v3, %s1688_s4 }
0x1268   :  { %v1077_v4 = vpop.permute.xlu1 %1076 }
0x1269   :  { %1521 = vmatmul.mubr.msk.f32.vlgmr.msra.gmra.mrb[10].mxu0 %vm58_vm0, %v1077_v4 }
0x133c   :  { %v1146_v5 = vpop.f32.mrb[10].mxu0 }
0x133d   :  { %v1151_v6 = vrot.slane %v1146_v5, 4  ;;  %v1522_v7 = vpop.f32.mrb[11].mxu0 }
0x133f   :  { %v1153_v8 = vadd.f32 %v1151_v6, %v1867_v9 }
0x1341   :  { %1672 = vtanh.f32 %v1153_v8  ;;  %v1335_v12 = vmul.f32 -1.442695, %v1153_v8 }
0x1343   :  { %1674 = vpow2.f32 %v1335_v12 }
0x134b   :  { %v1673_v10 = vpop.eup %1672 }
0x134c   :  { %1166 = vrot.lane.b32.xlu0 %v1673_v10, %s1689_s13 }
0x134d   :  { %v1675_v13 = vpop.eup %1674 }
0x134e   :  { %v1157_v14 = vadd.f32 1.0, %v1675_v13 }
0x1350   :  { %1676 = vrcp.f32 %v1157_v14 }
0x135a   :  { %v1677_v15 = vpop.eup %1676 }
0x135b   :  { %v1164_v19 = vmul.f32 %v1677_v15, %v1162_v18 }
0x13be   :  { %v1167_v16 = vpop.permute.xlu0 %1166 }
0x13bf   :  { %v1169_v17 = vmul.f32 %v1677_v15, %v1167_v16 }
0x13c1   :  { %1171 = vrot.lane.b32.xlu1 %v1169_v17, %s1688_s4 }
0x1433   :  { %v1172_v20 = vpop.permute.xlu1 %1171 }
0x1434   :  { %v1174_v21 = vadd.f32 %v1172_v20, %v1164_v19 }
0x1436   :  { %1678 = vtanh.f32 %v1174_v21  ;;  %v1269_v40 = vrot.slane %v1174_v21, 6 }
0x1440   :  { %v1679_v22 = vpop.eup %1678 }
0x1441   :  { %1177 = vrot.lane.b32.xlu0 %v1679_v22, %s1689_s13 }
0x14b3   :  { %v1178_v23 = vpop.permute.xlu0 %1177 }
0x14b4   :  { %v1180_v24 = vmul.f32 %v1677_v15, %v1178_v23 }
0x14b6   :  { %v1182_v11 = vrot.slane %v1180_v24, 4  ;;  %v1293_v26 = vsel %vm1289_vm4, %v1292_v25, %v1180_v24 }
0x14b8   :  { %1183 = vrot.lane.b32.xlu1 %v1182_v11, %s1688_s4 }
0x152a   :  { %v1184_v27 = vpop.permute.xlu1 %1183 }
0x152b   :  { %1532 = vmatmul.mubr.msk.f32.vlgmr.msra.gmra.mrb[10].mxu1 %vm58_vm0, %v1184_v27 }
0x15fe   :  { %v1253_v28 = vpop.f32.mrb[10].mxu1 }
0x15ff   :  { %v1258_v30 = vrot.slane %v1253_v28, 2  ;;  %v1533_v31 = vpop.f32.mrb[11].mxu1 }
0x1601   :  { %v1260_v32 = vadd.f32 %v1258_v30, %v1867_v9 }
0x1603   :  { %1680 = vtanh.f32 %v1260_v32  ;;  %v1337_v34 = vmul.f32 -1.442695, %v1260_v32 }
0x1605   :  { %1682 = vpow2.f32 %v1337_v34 }
0x160d   :  { %v1681_v33 = vpop.eup %1680 }
0x160e   :  { %1273 = vrot.lane.b32.xlu0 %v1681_v33, %s1689_s13 }
0x160f   :  { %v1683_v35 = vpop.eup %1682 }
0x1610   :  { %v1264_v36 = vadd.f32 1.0, %v1683_v35 }
0x1612   :  { %1684 = vrcp.f32 %v1264_v36 }
0x161c   :  { %v1685_v37 = vpop.eup %1684 }
0x161d   :  { %v1271_v41 = vmul.f32 %v1685_v37, %v1269_v40 }
0x1680   :  { %v1274_v38 = vpop.permute.xlu0 %1273 }
0x1681   :  { %v1276_v39 = vmul.f32 %v1685_v37, %v1274_v38 }
0x1683   :  { %1278 = vrot.lane.b32.xlu1 %v1276_v39, %s1688_s4 }
0x1687   :  { %1297 = vrot.lane.b32.xlu1 %v1918_v29, %s1688_s4 }
0x16f5   :  { %v1279_v9 = vpop.permute.xlu1 %1278 }
0x16f6   :  { %v1281_v42 = vadd.f32 %v1279_v9, %v1271_v41 }
0x16f8   :  { %1686 = vtanh.f32 %v1281_v42 }
0x16f9   :  { %v1298_v43 = vpop.permute.xlu1 %1297 }
0x16fa   :  { %1303 = vst.msk [vmem:[%s1981_s9] sm:$0xff] %vm58_vm0, %v1298_v43 }
0x1702   :  { %v1687_v44 = vpop.eup %1686 }
0x1703   :  { %1284 = vrot.lane.b32.xlu0 %v1687_v44, %s1689_s13 }
0x1775   :  { %v1285_v45 = vpop.permute.xlu0 %1284 }
0x1776   :  { %v1287_v46 = vmul.f32 %v1685_v37, %v1285_v45 }
0x1778   :  { %v1294_v47 = vsel %vm41_vm2, %v1293_v26, %v1287_v46 }
0x1779   :  { %1299 = vrot.lane.b32.xlu0 %v1294_v47, %s1688_s4 }
0x17eb   :  { %v1300_v29 = vpop.permute.xlu0 %1299 }
0x17ec   :  { %1304 = vst.msk [vmem:[%s1981_s9 + $0x8] sm:$0xff] %vm58_vm0, %v1300_v29 }

// kernel: coattention_forward.3
= control target key start
LH: loop header
LB: loop body
LE: loop exit
PB: predicated region body
PF: predicated region fallthrough
CT: control target
= control target key end

     0   :  { %s3507_s0 = inlined_call_operand.vmem [shape: f32[3,2,8,32], index: 0, kind: input, shape index: {}]   ;;  %s3508_s1 = inlined_call_operand.vmem [shape: f32[2,16,32], index: 1, kind: input, shape index: {}]   ;;  %s3509_s2 = inlined_call_operand.vmem [shape: f32[3,32,32], index: 2, kind: input, shape index: {}]   ;;  %s3510_s3 = inlined_call_operand.vmem [shape: f32[3,32,32], index: 3, kind: input, shape index: {}]   ;;  %s3511_s4 = inlined_call_operand.vmem [shape: f32[3,1,32], index: 4, kind: input, shape index: {}]   ;;  %s3512_s5 = inlined_call_operand.vmem [shape: f32[3,32,32], index: 5, kind: input, shape index: {}]   ;;  %s3513_s6 = inlined_call_operand.vmem [shape: f32[3,1,32], index: 6, kind: input, shape index: {}]   ;;  %s3514_s7 = inlined_call_operand.vmem [shape: f32[3,1,1,32], index: 7, kind: input, shape index: {}]   ;;  %s3515_s8 = inlined_call_operand.vmem [shape: f32[3,1,1,32], index: 8, kind: input, shape index: {}]   ;;  %s3516_s9 = inlined_call_operand.vmem [shape: f32[3], index: 9, kind: input, shape index: {}]   ;;  %s3517_s10 = inlined_call_operand.vmem [shape: f32[3], index: 10, kind: input, shape index: {}]   ;;  %s3518_s11 = inlined_call_operand.vmem [shape: f32[32,32], index: 11, kind: input, shape index: {}]   ;;  %s3519_s12 = inlined_call_operand.vmem [shape: f32[1,32], index: 12, kind: input, shape index: {}]   ;;  %s3520_s13 = inlined_call_operand.vmem [shape: f32[32,32], index: 13, kind: input, shape index: {}]   ;;  %s3521_s14 = inlined_call_operand.vmem [shape: f32[32,32], index: 14, kind: input, shape index: {}]   ;;  %s3522_s15 = inlined_call_operand.vmem [shape: f32[1,32], index: 15, kind: input, shape index: {}]   ;;  %s3523_s16 = inlined_call_operand.vmem [shape: f32[32,32], index: 16, kind: input, shape index: {}]   ;;  %s3524_s17 = inlined_call_operand.vmem [shape: f32[32,32], index: 17, kind: input, shape index: {}]   ;;  %s3525_s18 = inlined_call_operand.vmem [shape: f32[1,32], index: 18, kind: input, shape index: {}]   ;;  %s3526_s19 = inlined_call_operand.vmem [shape: f32[32,16], index: 19, kind: input, shape index: {}]   ;;  %s3527_s20 = inlined_call_operand.vmem [shape: f32[1,16], index: 20, kind: input, shape index: {}]   ;;  %s3528_s21 = inlined_call_operand.hbm [shape: f32[2,16], index: 21, kind: output, shape index: {}]  }
   0x1   :  { %3534 = sst [smem:[#allocation13_spill]] %s3507_s0 }
   0x2   :  { %3535 = sst [smem:[#allocation14_spill]] %s3508_s1 }
   0x3   :  { %3536 = sst [smem:[#allocation15_spill]] %s3509_s2 }
   0x4   :  { %3537 = sst [smem:[#allocation16_spill]] %s3510_s3 }
   0x5   :  { %3538 = sst [smem:[#allocation17_spill]] %s3511_s4 }
   0x6   :  { %3539 = sst [smem:[#allocation18_spill]] %s3512_s5 }
   0x7   :  { %3540 = sst [smem:[#allocation19_spill]] %s3516_s9 }
   0x8   :  { %3541 = sst [smem:[#allocation20_spill]] %s3517_s10 }
   0x9   :  { %3542 = sst [smem:[#allocation21_spill]] %s3525_s18 }
   0xa   :  { %3543 = sst [smem:[#allocation22_spill]] %s3527_s20 }
   0xb   :  { %3544 = sst [smem:[#allocation23_spill]] %s3528_s21 }
   0xc   :  { %26 = vsyncpa [#allocation5], 0 }
   0xd   :  { %27 = vsyncpa [#allocation7], 0 }
   0xe   :  { %28 = vsyncpa [#allocation4], 0  ;;  %s3192_s2 = smov 0  }
   0xf LB: > { %3545 = sst [smem:[#allocation12_spill]] %s3065_s2  ;;  %s3198_s25 = sadd.s32 4294967295, %s3065_s2   ;;  %s3065_s2 = sphi %s3192_s2, %s34_s2  }
  0x10   : > { %p2529_p0 = scmp.ge.s32.totalorder %s3065_s2, 1  ;;  %p541_p1 = scmp.lt.s32.totalorder %s3065_s2, 4 }
  0x11   : > { %s3546_s9 = sld [smem:[#allocation19_spill]]  ;;  %p3530_p4 = scmp.eq.s32.totalorder %s3198_s25, 0 }
  0x12   : > { %p3206_p3 = pnand %p2529_p0, %p541_p1  ;;  %s3548_s10 = sld [smem:[#allocation20_spill]] }
  0x14   : > { %s3547_s28 = scalar_select %p3206_p3, 1, 0 }
  0x15   : > { %p2905_p5 = pneg %p3206_p3 }
  0x17   : > { %s557_s3 = sshll.u32 %s3546_s9, 4  ;;  %p3218_p6 = pnand %p3530_p4, %p2905_p5  ;;  %s558_s3 = int_to_ptr.vmem [resolvable:$true] %s557_s3 }
  0x18   : > { %s568_s4 = sshll.u32 %s3548_s10, 4  ;;  %s2991_s5 = scalar_lea.vmem %s558_s3, 16  ;;  %s569_s4 = int_to_ptr.vmem [resolvable:$true] %s568_s4 }
  0x19   : > { %p2992_p7 = scmp.ne.s32.totalorder %s558_s3, %s2991_s5  ;;  %p2993_p8 = pneg %p3218_p6 }
  0x1a   : > { %p2999_p11 = scmp.lt.s32.totalorder %s558_s3, %s558_s3  ;;  %p3000_p12 = scmp.lt.s32.totalorder %s2991_s5, %s2991_s5 }
  0x1b   : > { %p2994_p9 = pnand %p2993_p8, %p2992_p7 }
  0x1c   : > { %p3001_p13 = por %p3000_p12, %p2999_p11 }
  0x1d   : > { %p2995_p10 = pneg %p2994_p9 }
  0x1f   : > { %p3002_p0 = pnand %p3001_p13, %p2995_p10 }
  0x21   : > { %3005 = shalt.err (!%p3002_p0)
}
  0x22   : > { %s3067_s22 = smov [#allocation3]   ;;  %s3006_s23 = scalar_lea.vmem %s569_s4, 16 }
  0x23   : > { %2908 = dma.vmem_to_smem (!%p3218_p6), %s558_s3, 16, %s3067_s22, [#allocation5]  }
  0x24   : > { %p3007_p1 = scmp.ne.s32.totalorder %s569_s4, %s3006_s23  ;;  %p3014_p4 = scmp.lt.s32.totalorder %s569_s4, %s569_s4 }
  0x25   : > { %p3015_p3 = scmp.lt.s32.totalorder %s3006_s23, %s3006_s23 }
  0x26   : > { %p3009_p5 = pnand %p3007_p1, %p2993_p8 }
  0x27   : > { %p3016_p7 = por %p3015_p3, %p3014_p4 }
  0x28   : > { %p3010_p2 = pneg %p3009_p5 }
  0x2a   : > { %p3017_p9 = pnand %p3016_p7, %p3010_p2 }
  0x2c   : > { %3020 = shalt.err (!%p3017_p9)
}
  0x2d   : > { %s3068_s1 = smov [#allocation6]   ;;  %p3550_p10 = scmp.ne.s32.totalorder %s3547_s28, 0 }
  0x2e   : > { %2911 = dma.vmem_to_smem (!%p3218_p6), %s569_s4, 16, %s3068_s1, [#allocation7]  }
  0x2f   : > { %667 = sbr.rel (%p3550_p10) target bundleno = 1931 (0x78b), region = 104  ;;  %p3551_p11 = scmp.eq.s32.totalorder (!%p3550_p10), %s3198_s25, 0 }
  0x36   : > { %3052 = dma.done.wait (%p3551_p11), [#allocation5], 16   ;;  %p3552_p12 = pmov %p3551_p11 }
  0x37   : > { %p3553_p8 = pmov %p3551_p11 }
  0x38   : > { %3054 = vsyncadd (%p3552_p12), [#allocation5], 4294967280 }
  0x39   : > { %3056 = dma.done.wait (%p3553_p8), [#allocation7], 16   ;;  %p3554_p3 = pmov %p3553_p8 }
  0x3b   : > { %3058 = vsyncadd (%p3554_p3), [#allocation7], 4294967280 }
  0x3c   : > { %677 = sfence }
  0x3d   : > { %p754_p2 = scmp.lt.s32.totalorder %s3198_s25, 2  ;;  %s3555_s29 = sld [smem:[#allocation15_spill]]  ;;  %vm796_vm0 = vcmask 261120   ;;  %v3069_v22 = vmov 0.0|0.0   ;;  %vm3070_vm2 = vmmov 0   ;;  %v3071_v27 = vmov 0.0  }
  0x3e   : > { %s3556_s5 = sld [smem:[#allocation13_spill]]  ;;  %s3557_s9 = sld [smem:[#allocation18_spill]]  ;;  %vm2845_vm1 = vmpackc.low %vm796_vm0, %vm796_vm0  ;;  %vm1374_vm3 = vcmask 64512   ;;  %vm1545_vm4 = vcmask 130048  }
  0x3f   : > { %s3240_s24 = scalar_select %p754_p2, %s3198_s25, 2 }
  0x40   : > { %s3558_s20 = sld [smem:[#allocation16_spill]]  ;;  %s3559_s21 = sld [smem:[#allocation14_spill]] }
  0x41   : > { %s2592_s26 = sshll.u32 %s3240_s24, 5  ;;  %s2591_s27 = sshll.u32 %s3240_s24, 4 }
  0x42   : > { %s1740_s2 = sld [smem:[#allocation3 + %s3198_s25]]  ;;  %p3561_p4 = scmp.ne.s32.totalorder %s3198_s25, 0 }
  0x43   : > { %s763_s0 = scalar_lea.vmem %s3555_s29, %s2592_s26  ;;  %vm3073_vm5 = vmmov (!%p3561_p4), 0   ;;  %vm1881_vm6 = vcmask (!%p3561_p4), 1041409   ;;  %vm1956_vm7 = vcmask (!%p3561_p4), 254976  }
  0x44   : > { %s758_s22 = scalar_lea.vmem %s3556_s5, %s2591_s27  ;;  %v792_v0 = vld [vmem:[%s763_s0] sm:$0xff]  ;;  %v793_v1 = vld [vmem:[%s763_s0 + $0x8] sm:$0xff]  ;;  %v794_v2 = vld [vmem:[%s763_s0 + $0x10] sm:$0xff]  ;;  %s776_s10 = scalar_lea.vmem %s3557_s9, %s2592_s26 }
  0x45   : > { %v2819_v3 = vpack.c.bf16 %v793_v1, %v792_v0  ;;  %v795_v4 = vld [vmem:[%s763_s0 + $0x18] sm:$0xff]  ;;  %v3256_v5 = vld [vmem:[%s758_s22] sm:$0xff]  ;;  %v965_v8 = vld [vmem:[%s776_s10 + $0x8] sm:$0xff]  ;;  %s3560_s0 = sld [smem:[#allocation17_spill]]  ;;  %s785_s9 = scalar_lea.vmem %s3515_s8, %s3240_s24 }
  0x46   : > { %s768_s18 = scalar_lea.vmem %s3558_s20, %s2592_s26  ;;  %v2823_v6 = vpack.c.bf16 %v795_v4, %v794_v2  ;;  %2677 = vmatprep.mubr.msk.f32.mxu0 %vm796_vm0, %v3256_v5  ;;  %v964_v7 = vld [vmem:[%s776_s10] sm:$0xff]  ;;  %2688 = vmatprep.mubr.msk.f32.mxu1 %vm796_vm0, %v3256_v5  ;;  %v966_v16 = vld [vmem:[%s776_s10 + $0x10] sm:$0xff]  ;;  %v967_v17 = vld [vmem:[%s776_s10 + $0x18] sm:$0xff] }
  0x47   : > { %v878_v9 = vld [vmem:[%s768_s18] sm:$0xff]  ;;  %2820 = vmatprep.subr.bf16.mxu0 %v2819_v3  ;;  %v879_v10 = vld [vmem:[%s768_s18 + $0x8] sm:$0xff]  ;;  %v880_v12 = vld [vmem:[%s768_s18 + $0x10] sm:$0xff]  ;;  %v2835_v14 = vpack.c.bf16 %v965_v8, %v964_v7  ;;  %v2839_v19 = vpack.c.bf16 %v967_v17, %v966_v16 }
  0x48   : > { %2822 = vmatpush3.bf16.msra.mxu0 %v2819_v3  ;;  %v2827_v11 = vpack.c.bf16 %v879_v10, %v878_v9  ;;  %v881_v13 = vld [vmem:[%s768_s18 + $0x18] sm:$0xff]  ;;  %v3262_v18 = vld [vmem:[%s758_s22 + $0x8] sm:$0xff]  ;;  %v3267_v20 = vld [vmem:[%s3559_s21] sm:$0xff]  ;;  %s779_s22 = scalar_lea.vmem %s3513_s6, %s3240_s24  ;;  %s782_s18 = scalar_lea.vmem %s3514_s7, %s3240_s24 }
  0x49   : > { %2824 = vmatprep.subr.bf16.mxu0 %v2823_v6  ;;  %v2831_v15 = vpack.c.bf16 %v881_v13, %v880_v12  ;;  %v3276_v21 = vld [vmem:[%s3559_s21 + $0x8] sm:$0xff]  ;;  %v3287_v24 = vld [vmem:[%s3559_s21 + $0x10] sm:$0xff]  ;;  %v3292_v25 = vld [vmem:[%s3559_s21 + $0x18] sm:$0xff] }
  0x4a   : > { %2828 = vmatprep.subr.bf16.mxu1 %v2827_v11  ;;  %v2844_v23 = vpack.c.bf16 %v3276_v21, %v3267_v20  ;;  %v2848_v26 = vpack.c.bf16 %v3292_v25, %v3287_v24  ;;  %v2549_v45 = vld [vmem:[%s779_s22] ss:$0 sm:$0xff] }
  0x4b   : > { %2830 = vmatpush3.bf16.msra.mxu1 %v2827_v11  ;;  %s771_s4 = scalar_lea.vmem %s3560_s0, %s3240_s24  ;;  %v2572_v11 = vld [vmem:[%s785_s9] ss:$0 sm:$0xff]  ;;  %s1719_s24 = sld [smem:[#allocation6 + %s3198_s25]] }
  0x4c   : > { %2826 = vmatpush3.bf16.msra.mxu0 %v2823_v6  ;;  %2832 = vmatprep.subr.bf16.mxu1 %v2831_v15  ;;  %v2546_v30 = vld [vmem:[%s771_s4] ss:$0 sm:$0xff] }
  0x4d   : > { %2836 = vmatprep.subr.bf16.mxu0 %v2835_v14 }
  0x4f   : > { %2678 = vmatmul.mubr.msk.f32.vlgmr.msra.gmra.mrb[0].mxu0 %vm796_vm0, %v3262_v18  ;;  %2834 = vmatpush3.bf16.msra.mxu1 %v2831_v15 }
  0x50   : > { %2838 = vmatpush3.bf16.msra.mxu0 %v2835_v14  ;;  %2699 = vmatprep.mubr.msk.f32.mxu0 %vm796_vm0, %v3267_v20 }
  0x51   : > { %2840 = vmatprep.subr.bf16.mxu0 %v2839_v19  ;;  %2843 = vmatprep.subr.bf16.mxu1 %v3069_v22 }
  0x52   : > { %2689 = vmatmul.mubr.msk.f32.vlgmr.msra.gmra.mrb[0].mxu1 %vm796_vm0, %v3262_v18 }
  0x53   : > { %2709 = vmatprep.mubr.msk.f32.mxu1 %vm3070_vm2, %v3071_v27 }
  0x54   : > { %2842 = vmatpush3.bf16.msra.mxu0 %v2839_v19 }
  0x55   : > { %2847 = vmatprep.subr.bf16.mxu0 %v3069_v22 }
  0x57   : > { %2700 = vmatmul.mubr.msk.f32.vlgmr.msra.gmra.mrb[2].mxu0 %vm796_vm0, %v3276_v21 }
  0x58   : > { %2846 = vmatpush3.bf16.xpose.msk.msra.mxu1 %vm2845_vm1, %v2844_v23  ;;  %2702 = vmatprep.mubr.msk.f32.mxu0 %vm796_vm0, %v3287_v24 }
  0x5b   : > { %2703 = vmatmul.mubr.msk.f32.gmra.mrb[4].mxu0 %vm796_vm0, %v3292_v25 }
  0x5c   : > { %2716 = vmatprep.mubr.msk.f32.mxu0 %vm3070_vm2, %v3071_v27 }
  0x5d   : > { %2850 = vmatpush3.bf16.xpose.msk.msra.mxu0 %vm2845_vm1, %v2848_v26 }
 0x122   : > { %v2679_v28 = vpop.f32.mrb[0].mxu0 }
 0x123   : > { %v869_v29 = vpop.f32.mrb[1].mxu0  ;;  %2717 = vmatmul.mubr.msk.f32.vlgmr.msra.gmra.mrb[6].mxu0 %vm796_vm0, %v2679_v28 }
 0x124   : > { %2710 = vmatmul.mubr.msk.f32.vlgmr.msra.gmra.mrb[2].mxu1 %vm796_vm0, %v869_v29  ;;  %2719 = vmatprep.subr.msk.mxu1 %vm796_vm0, %v869_v29 }
 0x125   : > { %2720 = vmatpush3.xpose.msk.msra.mxu1 %vm796_vm0, %v869_v29  ;;  %2721 = vmatprep.mubr.msk.f32.mxu1 %vm796_vm0, %v3267_v20  ;;  %v2690_v31 = vpop.f32.mrb[0].mxu1 }
 0x126   : > { %2724 = vmatprep.subr.msk.mxu1 %vm796_vm0, %v2679_v28  ;;  %v3317_v32 = vadd.f32 %v2690_v31, %v2546_v30  ;;  %v955_v33 = vpop.f32.mrb[1].mxu1 }
 0x127   : > { %v3319_v34 = vadd.f32 %v2546_v30, %v955_v33 }
 0x128   : > { %2722 = vmatmul.mubr.msk.f32.vlgmr.msra.gmra.mrb[4].mxu1 %vm796_vm0, %v3276_v21 }
 0x129   : > { %2725 = vmatpush3.xpose.msk.msra.mxu1 %vm796_vm0, %v2679_v28  ;;  %2726 = vmatprep.mubr.msk.f32.mxu1 %vm796_vm0, %v3287_v24 }
 0x12a   : > { %v2701_v35 = vpop.f32.mrb[2].mxu0  ;;  %2729 = vmatprep.subr.mxu0 %v3319_v34  ;;  %2734 = vmatprep.subr.mxu1 %v3317_v32 }
 0x12b   : > { %v1053_v36 = vpop.f32.mrb[3].mxu0  ;;  %2730 = vmatpush3.msra.mxu0 %v3319_v34  ;;  %v1059_v48 = vadd.f32 %v2701_v35, %v2549_v45 }
 0x12c   : > { %2727 = vmatmul.mubr.msk.f32.vlgmr.msra.gmra.mrb[6].mxu1 %vm796_vm0, %v3292_v25  ;;  %2851 = vmatprep.subr.bf16.mxu0 %v3069_v22  ;;  %v1054_v49 = vadd.f32 %v2549_v45, %v1053_v36 }
 0x12d   : > { %2735 = vmatpush3.msra.mxu1 %v3317_v32 }
 0x12e   : > { %v2704_v37 = vpop.f32.mrb[4].mxu0  ;;  %2854 = vmatprep.subr.bf16.mxu1 %v3069_v22  ;;  %v2852_v50 = vpack.c.bf16 %v1059_v48, %v1054_v49  ;;  %v2573_v22 = vld [vmem:[%s782_s18] ss:$0 sm:$0xff] }
 0x12f   : > { %v1063_v38 = vpop.f32.mrb[5].mxu0  ;;  %v1069_v51 = vadd.f32 %v2704_v37, %v2549_v45  ;;  %v1720_v37 = vstv %s1719_s24 }
 0x130   : > { %v1064_v52 = vadd.f32 %v2549_v45, %v1063_v38 }
 0x132   : > { %v2855_v56 = vpack.c.bf16 %v1069_v51, %v1064_v52 }
 0x1f6   : > { %v1214_v39 = vpop.f32.mrb[6].mxu0 }
 0x1f7   : > { %v1141_v40 = vpop.f32.mrb[2].mxu1  ;;  %v2718_v41 = vpop.f32.mrb[7].mxu0 }
 0x1f8   : > { %v2711_v42 = vpop.f32.mrb[3].mxu1 }
 0x1f9   : > { %v1741_v42 = vstv %s1740_s2 }
 0x1fb   : > { %v2723_v43 = vpop.f32.mrb[4].mxu1 }
 0x1fc   : > { %v1286_v44 = vpop.f32.mrb[5].mxu1 }
 0x1fd   : > { %2941 = vtanh.f32 %v1286_v44 }
 0x1fe   : > { %2943 = vtanh.f32 %v2723_v43 }
 0x1ff   : > { %v2728_v46 = vpop.f32.mrb[6].mxu1  ;;  %2945 = vtanh.f32 %v1141_v40 }
 0x200   : > { %v1361_v47 = vpop.f32.mrb[7].mxu1 }
 0x201   : > { %2947 = vtanh.f32 %v1361_v47 }
 0x202   : > { %2949 = vtanh.f32 %v2728_v46 }
 0x203   : > { %2951 = vtanh.f32 %v1214_v39 }
 0x207   : > { %v2942_v53 = vpop.eup %2941 }
 0x208   : > { %v2944_v54 = vpop.eup %2943  ;;  %2731 = vmatprep.mubr.msk.f32.mxu0 %vm1374_vm3, %v2942_v53 }
 0x209   : > { %2732 = vmatmul.mubr.msk.f32.vlgmr.msra.gmra.mrb[8].mxu0 %vm1374_vm3, %v2944_v54  ;;  %v2946_v55 = vpop.eup %2945 }
 0x20a   : > { %2853 = vmatpush3.bf16.msra.mxu0 %v2852_v50  ;;  %2743 = vmatprep.mubr.msk.f32.mxu0 %vm3070_vm2, %v3071_v27 }
 0x20b   : > { %v2948_v57 = vpop.eup %2947 }
 0x20c   : > { %v2950_v58 = vpop.eup %2949  ;;  %2736 = vmatprep.mubr.msk.f32.mxu1 %vm1374_vm3, %v2948_v57 }
 0x20d   : > { %2737 = vmatmul.mubr.msk.f32.vlgmr.msra.gmra.mrb[8].mxu1 %vm1374_vm3, %v2950_v58  ;;  %2744 = vmatmul.mubr.msk.f32.vlgmr.msra.gmra.mrb[10].mxu0 %vm1545_vm4, %v2946_v55  ;;  %v2952_v59 = vpop.eup %2951 }
 0x20e   : > { %2856 = vmatpush3.bf16.msra.mxu1 %v2855_v56  ;;  %2750 = vmatprep.mubr.msk.f32.mxu1 %vm3070_vm2, %v3071_v27 }
 0x211   : > { %2751 = vmatmul.mubr.msk.f32.vlgmr.msra.gmra.mrb[10].mxu1 %vm1545_vm4, %v2952_v59 }
 0x2dc   : > { %v2733_v60 = vpop.f32.mrb[8].mxu0 }
 0x2dd   : > { %v1538_v61 = vadd.f32 %v2733_v60, %v1059_v48  ;;  %v1447_v62 = vpop.f32.mrb[9].mxu0 }
 0x2de   : > { %v1537_v63 = vadd.f32 %v1447_v62, %v1054_v49 }
 0x2df   : > { %2953 = vtanh.f32 %v1538_v61 }
 0x2e0   : > { %2955 = vtanh.f32 %v1537_v63  ;;  %v2738_v0 = vpop.f32.mrb[8].mxu1  ;;  %v1615_v1 = vpop.f32.mrb[10].mxu0 }
 0x2e1   : > { %v1540_v2 = vadd.f32 %v2738_v0, %v1069_v51  ;;  %v1692_v3 = vadd.f32 %v1615_v1, %v3319_v34  ;;  %v1528_v4 = vpop.f32.mrb[9].mxu1  ;;  %v2745_v6 = vpop.f32.mrb[11].mxu0 }
 0x2e2   : > { %v1539_v7 = vadd.f32 %v1528_v4, %v1064_v52 }
 0x2e3   : > { %2957 = vtanh.f32 %v1540_v2 }
 0x2e4   : > { %2959 = vtanh.f32 %v1692_v3  ;;  %v1688_v8 = vpop.f32.mrb[10].mxu1 }
 0x2e5   : > { %2961 = vtanh.f32 %v1539_v7  ;;  %v1693_v9 = vadd.f32 %v1688_v8, %v3317_v32  ;;  %v2752_v10 = vpop.f32.mrb[11].mxu1 }
 0x2e7   : > { %2963 = vtanh.f32 %v1693_v9 }
 0x2e9   : > { %v2954_v12 = vpop.eup %2953 }
 0x2ea   : > { %v2956_v13 = vpop.eup %2955  ;;  %v1704_v17 = vmul.f32 %v2954_v12, %v2572_v11 }
 0x2eb   : > { %v1703_v14 = vmul.f32 %v2956_v13, %v2572_v11 }
 0x2ec   : > { %v1710_v27 = vsel %vm796_vm0, %v1704_v17, 0.0 }
 0x2ed   : > { %v2958_v15 = vpop.eup %2957  ;;  %v1707_v16 = vsel %vm796_vm0, %v1703_v14, 0.0 }
 0x2ee   : > { %v2960_v19 = vpop.eup %2959  ;;  %1708 = vadd.xlane.f32.xlu0 %v1707_v16  ;;  %v1706_v30 = vmul.f32 %v2958_v15, %v2572_v11 }
 0x2ef   : > { %v2962_v23 = vpop.eup %2961  ;;  %v1732_v28 = vmul.f32 %v2960_v19, %v2573_v22 }
 0x2f0   : > { %v1705_v26 = vmul.f32 %v2962_v23, %v2572_v11  ;;  %v1716_v33 = vsel %vm796_vm0, %v1706_v30, 0.0 }
 0x2f1   : > { %v2964_v31 = vpop.eup %2963  ;;  %v1734_v32 = vsel %vm796_vm0, %v1732_v28, 0.0 }
 0x2f2   : > { %v1713_v29 = vsel %vm796_vm0, %v1705_v26, 0.0  ;;  %1711 = vadd.xlane.f32.xlu0 %v1710_v27  ;;  %v1733_v34 = vmul.f32 %v2964_v31, %v2573_v22 }
 0x2f3   : > { %1714 = vadd.xlane.f32.xlu1 %v1713_v29 }
 0x2f4   : > { %v1737_v35 = vsel %vm796_vm0, %v1733_v34, 0.0 }
 0x2f6   : > { %1735 = vadd.xlane.f32.xlu0 %v1734_v32 }
 0x2f7   : > { %1717 = vadd.xlane.f32.xlu1 %v1716_v33 }
 0x2fb   : > { %1738 = vadd.xlane.f32.xlu1 %v1737_v35 }
 0x37b   : > { %v1709_v36 = vpop.xlane.xlu0 %1708 }
 0x37c   : > { %v1721_v39 = vadd.f32 %v1720_v37, %v1709_v36 }
 0x37f   : > { %v1712_v38 = vpop.xlane.xlu0 %1711 }
 0x380   : > { %v1715_v40 = vpop.xlane.xlu1 %1714  ;;  %v1722_v41 = vadd.f32 %v1720_v37, %v1712_v38 }
 0x381   : > { %v1723_v48 = vadd.f32 %v1720_v37, %v1715_v40 }
 0x382   : > { %v1744_v43 = vmax.f32 %v1721_v39, %v1722_v41 }
 0x383   : > { %v1736_v44 = vpop.xlane.xlu0 %1735 }
 0x384   : > { %v1745_v45 = vrot.slane %v1744_v43, 4  ;;  %v1718_v46 = vpop.xlane.xlu1 %1717  ;;  %v1742_v47 = vadd.f32 %v1741_v42, %v1736_v44 }
 0x385   : > { %v1724_v49 = vadd.f32 %v1720_v37, %v1718_v46 }
 0x386   : > { %v1746_v50 = vmax.f32 %v1744_v43, %v1745_v45  ;;  %v1812_v51 = vrot.slane %v1742_v47, 4 }
 0x387   : > { %v1751_v52 = vmax.f32 %v1723_v48, %v1724_v49 }
 0x388   : > { %v1747_v53 = vrot.slane %v1746_v50, 2  ;;  %v1813_v54 = vmax.f32 %v1742_v47, %v1812_v51  ;;  %v1739_v55 = vpop.xlane.xlu1 %1738 }
 0x389   : > { %v1752_v56 = vrot.slane %v1751_v52, 4  ;;  %v1743_v57 = vadd.f32 %v1741_v42, %v1739_v55 }
 0x38a   : > { %v1748_v58 = vmax.f32 %v1746_v50, %v1747_v53  ;;  %v1814_v59 = vrot.slane %v1813_v54, 2 }
 0x38b   : > { %v1753_v60 = vmax.f32 %v1751_v52, %v1752_v56  ;;  %v1818_v61 = vrot.slane %v1743_v57, 4 }
 0x38c   : > { %v1749_v62 = vrot.slane %v1748_v58, 1  ;;  %v1815_v63 = vmax.f32 %v1813_v54, %v1814_v59 }
 0x38d   : > { %v1754_v0 = vrot.slane %v1753_v60, 2  ;;  %v1819_v1 = vmax.f32 %v1743_v57, %v1818_v61 }
 0x38e   : > { %v1750_v2 = vmax.f32 %v1748_v58, %v1749_v62  ;;  %v1816_v3 = vrot.slane %v1815_v63, 1 }
 0x38f   : > { %v1755_v4 = vmax.f32 %v1753_v60, %v1754_v0  ;;  %v1820_v6 = vrot.slane %v1819_v1, 2 }
 0x390   : > { %v1758_v7 = vsub.f32 %v1721_v39, %v1750_v2  ;;  %v1759_v8 = vsub.f32 %v1722_v41, %v1750_v2  ;;  %v1817_v9 = vmax.f32 %v1815_v63, %v1816_v3 }
 0x391   : > { %v1756_v10 = vrot.slane %v1755_v4, 1  ;;  %v1821_v11 = vmax.f32 %v1819_v1, %v1820_v6 }
 0x392   : > { %v1762_v12 = vmul.f32 1.442695, %v1758_v7  ;;  %v1764_v13 = vmul.f32 1.442695, %v1759_v8  ;;  %v1824_v14 = vsub.f32 %v1742_v47, %v1817_v9 }
 0x393   : > { %v1757_v15 = vmax.f32 %v1755_v4, %v1756_v10  ;;  %v1822_v16 = vrot.slane %v1821_v11, 1 }
 0x394   : > { %2965 = vpow2.f32 %v1762_v12  ;;  %v1826_v17 = vmul.f32 1.442695, %v1824_v14 }
 0x395   : > { %2967 = vpow2.f32 %v1764_v13  ;;  %v1760_v19 = vsub.f32 %v1723_v48, %v1757_v15  ;;  %v1761_v22 = vsub.f32 %v1724_v49, %v1757_v15  ;;  %v1823_v23 = vmax.f32 %v1821_v11, %v1822_v16 }
 0x396   : > { %2969 = vpow2.f32 %v1826_v17 }
 0x397   : > { %v1766_v26 = vmul.f32 1.442695, %v1760_v19  ;;  %v1768_v27 = vmul.f32 1.442695, %v1761_v22  ;;  %v1825_v28 = vsub.f32 %v1743_v57, %v1823_v23 }
 0x399   : > { %2971 = vpow2.f32 %v1766_v26  ;;  %v1828_v29 = vmul.f32 1.442695, %v1825_v28 }
 0x39a   : > { %2973 = vpow2.f32 %v1768_v27 }
 0x39b   : > { %2975 = vpow2.f32 %v1828_v29 }
 0x39e   : > { %v2966_v30 = vpop.eup %2965 }
 0x39f   : > { %v2968_v31 = vpop.eup %2967 }
 0x3a0   : > { %v2970_v32 = vpop.eup %2969  ;;  %v1770_v33 = vadd.f32 %v2968_v31, %v2966_v30 }
 0x3a1   : > { %v1830_v34 = vrot.slane %v2970_v32, 4 }
 0x3a2   : > { %v1771_v35 = vrot.slane %v1770_v33, 4 }
 0x3a3   : > { %v2972_v36 = vpop.eup %2971  ;;  %v1831_v37 = vadd.f32 %v2970_v32, %v1830_v34 }
 0x3a4   : > { %v2974_v38 = vpop.eup %2973  ;;  %v1772_v39 = vadd.f32 %v1771_v35, %v1770_v33 }
 0x3a5   : > { %v2976_v40 = vpop.eup %2975  ;;  %v1777_v41 = vadd.f32 %v2974_v38, %v2972_v36  ;;  %v1832_v42 = vrot.slane %v1831_v37, 2 }
 0x3a6   : > { %v1773_v43 = vrot.slane %v1772_v39, 2  ;;  %v1836_v44 = vrot.slane %v2976_v40, 4 }
 0x3a7   : > { %v1778_v45 = vrot.slane %v1777_v41, 4  ;;  %v1833_v46 = vadd.f32 %v1832_v42, %v1831_v37 }
 0x3a8   : > { %v1774_v47 = vadd.f32 %v1773_v43, %v1772_v39  ;;  %v1837_v48 = vadd.f32 %v2976_v40, %v1836_v44 }
 0x3a9   : > { %v1779_v49 = vadd.f32 %v1778_v45, %v1777_v41  ;;  %v1834_v50 = vrot.slane %v1833_v46, 1 }
 0x3aa   : > { %v1775_v51 = vrot.slane %v1774_v47, 1  ;;  %v1838_v52 = vrot.slane %v1837_v48, 2 }
 0x3ab   : > { %v1780_v53 = vrot.slane %v1779_v49, 2  ;;  %v1835_v54 = vadd.f32 %v1834_v50, %v1833_v46  ;;  %v1870_v50 = vld [vmem:[%s3518_s11 + $0x10] sm:$0xff] (!%p3561_p4) }
 0x3ac   : > { %v1776_v55 = vadd.f32 %v1775_v51, %v1774_v47  ;;  %v1839_v56 = vadd.f32 %v1838_v52, %v1837_v48  ;;  %v1868_v48 = vld [vmem:[%s3518_s11] sm:$0xff] (!%p3561_p4)  ;;  %v3072_v51 = vmov (!%p3561_p4), 0.0|0.0  }
 0x3ad   : > { %v1781_v57 = vadd.f32 %v1780_v53, %v1779_v49  ;;  %2977 = vrcp.f32 %v1835_v54  ;;  %v1869_v49 = vld [vmem:[%s3518_s11 + $0x8] sm:$0xff] (!%p3561_p4)  ;;  %2857 = vmatprep.subr.bf16.mxu0 (!%p3561_p4), %v3072_v51  ;;  %v1871_v53 = vld [vmem:[%s3518_s11 + $0x18] sm:$0xff] (!%p3561_p4)  ;;  %v3074_v54 = vmov (!%p3561_p4), 0.0  }
 0x3ae   : > { %2979 = vrcp.f32 %v1776_v55  ;;  %v1840_v58 = vrot.slane %v1839_v56, 1  ;;  %v2858_v52 = vpack.c.bf16 (!%p3561_p4), %v1869_v49, %v1868_v48  ;;  %2761 = vmatprep.mubr.msk.f32.mxu0 (!%p3561_p4), %vm3073_vm5, %v3074_v54  ;;  %v2861_v55 = vpack.c.bf16 (!%p3561_p4), %v1871_v53, %v1870_v50 }
 0x3af   : > { %v1782_v59 = vrot.slane %v1781_v57, 1 }
 0x3b0   : > { %v1841_v60 = vadd.f32 %v1840_v58, %v1839_v56  ;;  %2859 = vmatpush3.bf16.msra.mxu0 (!%p3561_p4), %v2858_v52 }
 0x3b1   : > { %v1783_v61 = vadd.f32 %v1782_v59, %v1781_v57  ;;  %2860 = vmatprep.subr.bf16.mxu0 (!%p3561_p4), %v3072_v51  ;;  %v2575_v57 = vld [vmem:[%s3519_s12] ss:$0 sm:$0xff] (!%p3561_p4) }
 0x3b2   : > { %2981 = vrcp.f32 %v1841_v60 }
 0x3b3   : > { %2983 = vrcp.f32 %v1783_v61 }
 0x3b4   : > { %2862 = vmatpush3.bf16.msra.mxu0 (!%p3561_p4), %v2861_v55 }
 0x3b7   : > { %v2978_v62 = vpop.eup %2977 }
 0x3b8   : > { %v2980_v63 = vpop.eup %2979  ;;  %v1843_v0 = vmul.f32 %v2978_v62, %v2970_v32 }
 0x3b9   : > { %v1785_v1 = vmul.f32 %v2980_v63, %v2966_v30  ;;  %v1786_v2 = vmul.f32 %v2980_v63, %v2968_v31 }
 0x3ba   : > { %v1846_v3 = vmul.f32 %v1843_v0, %v3256_v5 }
 0x3bb   : > { %v1790_v4 = vmul.f32 %v1785_v1, %v3267_v20  ;;  %v1791_v6 = vmul.f32 %v1786_v2, %v3276_v21 }
 0x3bc   : > { %v2982_v7 = vpop.eup %2981  ;;  %v1848_v8 = vsel %vm796_vm0, %v1846_v3, 0.0 }
 0x3bd   : > { %v2984_v9 = vpop.eup %2983  ;;  %v1794_v10 = vsel %vm796_vm0, %v1790_v4, 0.0  ;;  %v1795_v11 = vsel %vm796_vm0, %v1791_v6, 0.0  ;;  %v1849_v12 = vrot.slane %v1848_v8, 4  ;;  %v1845_v13 = vmul.f32 %v2982_v7, %v2976_v40 }
 0x3be   : > { %v1796_v14 = vadd.f32 %v1795_v11, %v1794_v10  ;;  %v1788_v15 = vmul.f32 %v2984_v9, %v2972_v36  ;;  %v1789_v16 = vmul.f32 %v2984_v9, %v2974_v38 }
 0x3bf   : > { %v1850_v17 = vadd.f32 %v1849_v12, %v1848_v8  ;;  %v1847_v5 = vmul.f32 %v1845_v13, %v3262_v18 }
 0x3c0   : > { %v1797_v19 = vrot.slane %v1796_v14, 4  ;;  %v1792_v20 = vmul.f32 %v1788_v15, %v3287_v24  ;;  %v1793_v21 = vmul.f32 %v1789_v16, %v3292_v25 }
 0x3c1   : > { %v1851_v22 = vrot.slane %v1850_v17, 2  ;;  %v1855_v23 = vsel %vm796_vm0, %v1847_v5, 0.0 }
 0x3c2   : > { %v1798_v26 = vadd.f32 %v1797_v19, %v1796_v14  ;;  %v1803_v27 = vsel %vm796_vm0, %v1792_v20, 0.0  ;;  %v1804_v28 = vsel %vm796_vm0, %v1793_v21, 0.0  ;;  %v1856_v29 = vrot.slane %v1855_v23, 4 }
 0x3c3   : > { %v1805_v30 = vadd.f32 %v1804_v28, %v1803_v27  ;;  %v1852_v31 = vadd.f32 %v1851_v22, %v1850_v17 }
 0x3c4   : > { %v1799_v32 = vrot.slane %v1798_v26, 2  ;;  %v1857_v33 = vadd.f32 %v1856_v29, %v1855_v23 }
 0x3c5   : > { %v1806_v34 = vrot.slane %v1805_v30, 4  ;;  %v1853_v35 = vrot.slane %v1852_v31, 1 }
 0x3c6   : > { %v1800_v18 = vadd.f32 %v1799_v32, %v1798_v26  ;;  %v1858_v36 = vrot.slane %v1857_v33, 2 }
 0x3c7   : > { %v1807_v24 = vadd.f32 %v1806_v34, %v1805_v30  ;;  %v1854_v40 = vadd.f32 %v1853_v35, %v1852_v31 }
 0x3c8   : > { %v1801_v37 = vrot.slane %v1800_v18, 1  ;;  %v1859_v25 = vadd.f32 %v1858_v36, %v1857_v33 }
 0x3c9   : > { %v1808_v38 = vrot.slane %v1807_v24, 2 }
 0x3ca   : > { %v1802_v39 = vadd.f32 %v1801_v37, %v1800_v18  ;;  %v1860_v42 = vrot.slane %v1859_v25, 1 }
 0x3cb   : > { %v1809_v41 = vadd.f32 %v1808_v38, %v1807_v24  ;;  %1867 = sbr.rel (%p3561_p4) target bundleno = 1206 (0x4b6), region = 116 }
 0x3cc   : > { %v3374_v43 = vadd.f32 %v1854_v40, %v1802_v39  ;;  %v1861_v46 = vadd.f32 %v1860_v42, %v1859_v25 }
 0x3cd   : > { %v1810_v44 = vrot.slane %v1809_v41, 1 }
 0x3cf   : > { %v1811_v45 = vadd.f32 %v1810_v44, %v1809_v41 }
 0x3d1   : > { %v3376_v47 = vadd.f32 %v1861_v46, %v1811_v45 }
 0x3d3   : > { %v1882_v56 = vsel %vm1881_vm6, %v3376_v47, %v3374_v43 }
 0x3d4   : > { %2762 = vmatmul.mubr.msk.f32.vlgmr.msra.gmra.mrb[0].mxu0 %vm796_vm0, %v1882_v56 }
 0x4a7   : > { %v1951_v58 = vpop.f32.mrb[0].mxu0 }
 0x4a8   : > { %v1952_v59 = vadd.f32 %v2575_v57, %v1951_v58  ;;  %v2763_v60 = vpop.f32.mrb[1].mxu0 }
 0x4aa   : > { %2985 = vtanh.f32 %v1952_v59 }
 0x4b4   : > { %v2986_v61 = vpop.eup %2985 }
 0x4b5   : > { %1957 = vst.msk [vmem:[#allocation2] sm:$0x3] %vm1956_vm7, %v2986_v61 }
 0x4b6 PF: > { %p2577_p6 = scmp.ne.s32.totalorder %s3198_s25, 1 }
 0x4b7   : > { %v1967_v62 = vld [vmem:[%s3521_s14] sm:$0xff] (!%p2577_p6)  ;;  %v1968_v63 = vld [vmem:[%s3521_s14 + $0x8] sm:$0xff] (!%p2577_p6)  ;;  %v3075_v1 = vmov (!%p2577_p6), 0.0|0.0   ;;  %v1969_v4 = vld [vmem:[%s3521_s14 + $0x10] sm:$0xff] (!%p2577_p6)  ;;  %vm3076_vm8 = vmmov (!%p2577_p6), 0   ;;  %v3077_v10 = vmov (!%p2577_p6), 0.0  }
 0x4b8   : > { %1961 = sbr.rel (%p2577_p6) target bundleno = 1446 (0x5a6), region = 120  ;;  %v1962_v0 = vld [vmem:[%s3520_s13] sm:$0xff] (!%p2577_p6)  ;;  %2863 = vmatprep.subr.bf16.mxu0 (!%p2577_p6), %v3075_v1  ;;  %2869 = vmatprep.subr.bf16.mxu1 (!%p2577_p6), %v3075_v1  ;;  %v2864_v2 = vpack.c.bf16 (!%p2577_p6), %v1968_v63, %v1967_v62  ;;  %v1963_v3 = vld [vmem:[%s3520_s13 + $0x8] sm:$0xff] (!%p2577_p6)  ;;  %v1970_v6 = vld [vmem:[%s3521_s14 + $0x18] sm:$0xff] (!%p2577_p6)  ;;  %vm2046_vm9 = vcmask (!%p2577_p6), 1041409   ;;  %vm2129_vm10 = vcmask (!%p2577_p6), 254976  }
 0x4b9   : > { %v2870_v7 = vpack.c.bf16 (!%p2577_p6), %v1963_v3, %v1962_v0  ;;  %v1964_v8 = vld [vmem:[%s3520_s13 + $0x10] sm:$0xff] (!%p2577_p6)  ;;  %v1965_v9 = vld [vmem:[%s3520_s13 + $0x18] sm:$0xff] (!%p2577_p6)  ;;  %2772 = vmatprep.mubr.msk.f32.mxu0 (!%p2577_p6), %vm3076_vm8, %v3077_v10  ;;  %2783 = vmatprep.mubr.msk.f32.mxu1 (!%p2577_p6), %vm3076_vm8, %v3077_v10  ;;  %v2867_v11 = vpack.c.bf16 (!%p2577_p6), %v1970_v6, %v1969_v4  ;;  %v2047_v14 = vsel (!%p2577_p6), %vm2046_vm9, %v3376_v47, %v3374_v43  ;;  %v2580_v17 = vld [vmem:[%s3522_s15] ss:$0 sm:$0xff] (!%p2577_p6) }
 0x4ba   : > { %2865 = vmatpush3.bf16.msra.mxu0 (!%p2577_p6), %v2864_v2  ;;  %v2873_v12 = vpack.c.bf16 (!%p2577_p6), %v1965_v9, %v1964_v8 }
 0x4bb   : > { %2871 = vmatpush3.bf16.msra.mxu1 (!%p2577_p6), %v2870_v7  ;;  %2866 = vmatprep.subr.bf16.mxu0 (!%p2577_p6), %v3075_v1 }
 0x4bc   : > { %2872 = vmatprep.subr.bf16.mxu1 (!%p2577_p6), %v3075_v1  ;;  %v1966_v13 = vld [vmem:[#allocation2] sm:$0x3] (!%p2577_p6) }
 0x4be   : > { %2868 = vmatpush3.bf16.msra.mxu0 (!%p2577_p6), %v2867_v11 }
 0x4bf   : > { %2874 = vmatpush3.bf16.msra.mxu1 %v2873_v12 }
 0x4c1   : > { %2773 = vmatmul.mubr.msk.f32.vlgmr.msra.gmra.mrb[0].mxu0 %vm796_vm0, %v1966_v13 }
 0x4c2   : > { %2784 = vmatmul.mubr.msk.f32.vlgmr.msra.gmra.mrb[0].mxu1 %vm796_vm0, %v2047_v14 }
 0x594   : > { %v2040_v15 = vpop.f32.mrb[0].mxu0 }
 0x595   : > { %v2116_v16 = vpop.f32.mrb[0].mxu1  ;;  %v2774_v5 = vpop.f32.mrb[1].mxu0 }
 0x596   : > { %v2117_v19 = vadd.f32 %v2116_v16, %v2040_v15  ;;  %v2785_v20 = vpop.f32.mrb[1].mxu1 }
 0x598   : > { %v2127_v21 = vadd.f32 %v2580_v17, %v2117_v19 }
 0x59a   : > { %2987 = vtanh.f32 %v2127_v21 }
 0x5a4   : > { %v2988_v22 = vpop.eup %2987 }
 0x5a5   : > { %2130 = vst.msk [vmem:[#allocation2] sm:$0x3] %vm2129_vm10, %v2988_v22 }
 0x5a6 PF: > { %p2581_p13 = scmp.ne.s32.totalorder %s3198_s25, 2 }
 0x5a7   : > { %v2140_v23 = vld [vmem:[%s3524_s17] sm:$0xff] (!%p2581_p13)  ;;  %v2141_v26 = vld [vmem:[%s3524_s17 + $0x8] sm:$0xff] (!%p2581_p13)  ;;  %v3078_v28 = vmov (!%p2581_p13), 0.0|0.0   ;;  %v2142_v31 = vld [vmem:[%s3524_s17 + $0x10] sm:$0xff] (!%p2581_p13)  ;;  %vm3079_vm11 = vmmov (!%p2581_p13), 0   ;;  %v3080_v35 = vmov (!%p2581_p13), 0.0  }
 0x5a8   : > { %2134 = sbr.rel (%p2581_p13) target bundleno = 1900 (0x76c), region = 124  ;;  %v2135_v27 = vld [vmem:[%s3523_s16] sm:$0xff] (!%p2581_p13)  ;;  %2875 = vmatprep.subr.bf16.mxu0 (!%p2581_p13), %v3078_v28  ;;  %2881 = vmatprep.subr.bf16.mxu1 (!%p2581_p13), %v3078_v28  ;;  %v2876_v29 = vpack.c.bf16 (!%p2581_p13), %v2141_v26, %v2140_v23  ;;  %v2136_v30 = vld [vmem:[%s3523_s16 + $0x8] sm:$0xff] (!%p2581_p13)  ;;  %v2143_v32 = vld [vmem:[%s3524_s17 + $0x18] sm:$0xff] (!%p2581_p13)  ;;  %vm2219_vm12 = vcmask (!%p2581_p13), 1041409   ;;  %s3562_s26 = sld [smem:[#allocation21_spill]] (!%p2581_p13) }
 0x5a9   : > { %v2882_v33 = vpack.c.bf16 (!%p2581_p13), %v2136_v30, %v2135_v27  ;;  %v2137_v34 = vld [vmem:[%s3523_s16 + $0x10] sm:$0xff] (!%p2581_p13)  ;;  %v2138_v18 = vld [vmem:[%s3523_s16 + $0x18] sm:$0xff] (!%p2581_p13)  ;;  %2794 = vmatprep.mubr.msk.f32.mxu0 (!%p2581_p13), %vm3079_vm11, %v3080_v35  ;;  %2805 = vmatprep.mubr.msk.f32.mxu1 (!%p2581_p13), %vm3079_vm11, %v3080_v35  ;;  %v2879_v36 = vpack.c.bf16 (!%p2581_p13), %v2143_v32, %v2142_v31  ;;  %v2220_v25 = vsel (!%p2581_p13), %vm2219_vm12, %v3376_v47, %v3374_v43  ;;  %v2302_v38 = vld [vmem:[%s3526_s19] sm:$0xff] (!%p2581_p13)  ;;  %s3563_s28 = sld [smem:[#allocation22_spill]] (!%p2581_p13)  ;;  %vm2386_vm13 = vcmask (!%p2581_p13), 123904  }
 0x5aa   : > { %2877 = vmatpush3.bf16.msra.mxu0 (!%p2581_p13), %v2876_v29  ;;  %v2885_v24 = vpack.c.bf16 (!%p2581_p13), %v2138_v18, %v2137_v34  ;;  %v2303_v39 = vld [vmem:[%s3526_s19 + $0x8] sm:$0xff] (!%p2581_p13)  ;;  %v2304_v40 = vld [vmem:[%s3526_s19 + $0x10] sm:$0xff] (!%p2581_p13)  ;;  %v2305_v42 = vld [vmem:[%s3526_s19 + $0x18] sm:$0xff] (!%p2581_p13) }
 0x5ab   : > { %2883 = vmatpush3.bf16.msra.mxu1 (!%p2581_p13), %v2882_v33  ;;  %2878 = vmatprep.subr.bf16.mxu0 (!%p2581_p13), %v3078_v28  ;;  %v2888_v41 = vpack.c.bf16 (!%p2581_p13), %v2303_v39, %v2302_v38  ;;  %v2891_v43 = vpack.c.bf16 (!%p2581_p13), %v2305_v42, %v2304_v40 }
 0x5ac   : > { %2884 = vmatprep.subr.bf16.mxu1 (!%p2581_p13), %v3078_v28  ;;  %v2139_v37 = vld [vmem:[#allocation2] sm:$0x3] (!%p2581_p13) }
 0x5ae   : > { %2880 = vmatpush3.bf16.msra.mxu0 (!%p2581_p13), %v2879_v36  ;;  %v2584_v46 = vld [vmem:[%s3562_s26] ss:$0 sm:$0xff] (!%p2581_p13) }
 0x5af   : > { %2886 = vmatpush3.bf16.msra.mxu1 %v2885_v24  ;;  %2887 = vmatprep.subr.bf16.mxu0 %v3078_v28  ;;  %v2585_v52 = vld [vmem:[%s3563_s28] ss:$0 sm:$0xff] }
 0x5b1   : > { %2795 = vmatmul.mubr.msk.f32.vlgmr.msra.gmra.mrb[0].mxu0 %vm796_vm0, %v2139_v37 }
 0x5b2   : > { %2806 = vmatmul.mubr.msk.f32.vlgmr.msra.gmra.mrb[0].mxu1 %vm796_vm0, %v2220_v25  ;;  %2816 = vmatprep.mubr.msk.f32.mxu0 %vm3079_vm11, %v3080_v35 }
 0x5b3   : > { %2889 = vmatpush3.bf16.msra.mxu0 %v2888_v41 }
 0x5b4   : > { %2890 = vmatprep.subr.bf16.mxu0 %v3078_v28 }
 0x5b7   : > { %2892 = vmatpush3.bf16.msra.mxu0 %v2891_v43 }
 0x684   : > { %v2213_v44 = vpop.f32.mrb[0].mxu0 }
 0x685   : > { %v2289_v45 = vpop.f32.mrb[0].mxu1  ;;  %v2796_v47 = vpop.f32.mrb[1].mxu0 }
 0x686   : > { %v2290_v48 = vadd.f32 %v2289_v45, %v2213_v44  ;;  %v2807_v49 = vpop.f32.mrb[1].mxu1 }
 0x688   : > { %v2300_v50 = vadd.f32 %v2584_v46, %v2290_v48 }
 0x68a   : > { %2989 = vtanh.f32 %v2300_v50 }
 0x694   : > { %v2990_v51 = vpop.eup %2989 }
 0x695   : > { %2817 = vmatmul.mubr.msk.f32.vlgmr.msra.gmra.mrb[2].mxu0 %vm796_vm0, %v2990_v51 }
 0x768   : > { %v2382_v53 = vpop.f32.mrb[2].mxu0 }
 0x769   : > { %v2383_v54 = vadd.f32 %v2585_v52, %v2382_v53  ;;  %v2818_v55 = vpop.f32.mrb[3].mxu0 }
 0x76b   : > { %2387 = vst.msk [vmem:[#allocation8] sm:$0x3] %vm2386_vm13, %v2383_v54 }
 0x76c PF: > { %p2916_p0 = scmp.eq.s32.totalorder %s3198_s25, 2  ;;  %s3081_s29 = smov [#allocation8]  }
 0x76d   : > { %s2395_s0 = sshll.u32 %s3081_s29, 4  ;;  %s2396_s0 = int_to_ptr.vmem [resolvable:$true] %s2395_s0 }
 0x76e   : > { %s3021_s4 = scalar_lea.vmem %s2396_s0, 32  ;;  %p3028_p9 = scmp.lt.s32.totalorder %s2396_s0, %s2396_s0 }
 0x76f   : > { %p3022_p1 = scmp.ne.s32.totalorder %s2396_s0, %s3021_s4  ;;  %p3029_p10 = scmp.lt.s32.totalorder %s3021_s4, %s3021_s4 }
 0x771   : > { %p3023_p5 = pnand %p3022_p1, %p2916_p0  ;;  %p3030_p11 = por %p3029_p10, %p3028_p9 }
 0x773   : > { %p3024_p7 = pneg %p3023_p5 }
 0x775   : > { %p3031_p12 = pnand %p3030_p11, %p3024_p7 }
 0x777   : > { %3034 = shalt.err (!%p3031_p12)
}
 0x778   : > { %s3564_s22 = sld [smem:[#allocation23_spill]] }
 0x77e   : > { %s3035_s23 = scalar_lea.hbm %s3564_s22, 32 }
 0x77f   : > { %p3036_p8 = scmp.ne.s32.totalorder %s3564_s22, %s3035_s23  ;;  %p3041_p4 = scmp.lt.u32.totalorder %s3035_s23, %s3564_s22 }
 0x781   : > { %p3037_p3 = pnand %p3036_p8, %p2916_p0 }
 0x783   : > { %p3038_p2 = pneg %p3037_p3 }
 0x785   : > { %p3043_p6 = pnand %p3041_p4, %p3038_p2 }
 0x787   : > { %3046 = shalt.err (!%p3043_p6)
}
 0x788   : > { %2902 = dma.vmem_to_hbm [thread:$0]  (%p2916_p0), %s2396_s0, 32, %s3564_s22, [#allocation4]  }
 0x789   : > { %3060 = dma.done.wait (%p2916_p0), [#allocation4], 32  }
 0x78a   : > { %3062 = vsyncadd (%p2916_p0), [#allocation4], 4294967264 }
 0x78b PF: > { %s3565_s2 = sld [smem:[#allocation12_spill]] }
 0x791   : > { %s34_s2 = sadd.s32 1, %s3565_s2  }
 0x792   : > { %p31_p13 = scmp.ge.s32.totalorder %s34_s2, 5  }
 0x794   :  { %33 = sbr.rel (!%p31_p13) target bundleno = 15 (0xf), region = 173 }
 0x79b   :  { %2408 = vsyncpa [#allocation4], 1 }
 0x79c   :  { %2410 = vsyncpa [#allocation4 + $0x1], 1 }
 0x79d   :  { %2411 = vsyncpa [#allocation5], 1 }
 0x79e   :  { %2413 = vsyncpa [#allocation5 + $0x1], 1 }
 0x79f   :  { %2414 = vsyncpa [#allocation7], 1 }

</bundles_post_ra>
